<compile_context>
chip_gen: v7x
topology: tpu7x:2x2x1
jax: 0.10.0
libtpu: 0.0.40
codegen_flags: <defaults>
</compile_context>

<pallas_src>
import functools

import jax
import jax.numpy as jnp
from jax.experimental import pallas as pl
from jax.experimental.pallas import tpu as pltpu


def _round_up(x, m):
    return ((x + m - 1) // m) * m


# --------------------------------------------------------------------------
# Kernel
# --------------------------------------------------------------------------
def _vae_kernel(x_ref, eps_ref,
                w1_ref, w2_ref, wh_ref, wd1_ref, wd2_ref, wd3_ref, b_ref,
                out_ref, *, lat_p, alpha):
    """Whole VAE forward for one batch tile, entirely in VMEM.

    All feature widths are multiples of 128 (zero-padded); the output is a
    lane-dense slab  [ x_rec (in_p) | mu (lat_p) | logvar (lat_p) ]  written
    with two aligned unmasked stores.
    """
    f32, bf16 = jnp.float32, jnp.bfloat16

    if alpha is None:
        act = lambda v: jnp.maximum(v, 0.0)
    else:
        act = lambda v: jnp.where(v > 0.0, v, alpha * v)   # LeakyReLU

    h1_p = w1_ref.shape[1]
    h2_p = w2_ref.shape[1]
    two_lat_p = wh_ref.shape[1]
    in_p = wd3_ref.shape[1]

    # Hoisted bias reads (one broadcast add per layer); all 128-lane aligned.
    b1 = b_ref[0:1, :h1_p]
    b2 = b_ref[1:2, :h2_p]
    bh = b_ref[2:3, :two_lat_p]
    bd1 = b_ref[3:4, :h2_p]
    bd2 = b_ref[4:5, :h1_p]
    bd3 = b_ref[5:6, :in_p]

    dot = lambda a, w_ref: jnp.dot(a.astype(bf16), w_ref[...],
                                   preferred_element_type=f32)

    x = x_ref[...]

    # --- encoder: Linear -> act -> Linear -> act ---
    h1 = act(dot(x, w1_ref) + b1)
    h2 = act(dot(h1, w2_ref) + b2)

    # --- fused mu|logvar head (split point 128-aligned) ---
    mulv = dot(h2, wh_ref) + bh
    mu = mulv[:, :lat_p]
    logvar = mulv[:, lat_p:]

    # --- reparameterization: z = mu + eps * exp(0.5 * logvar)  (f32 VPU/EUP) ---
    z = mu + eps_ref[...] * jnp.exp(0.5 * logvar)

    # --- decoder: Linear -> act -> Linear -> act -> Linear ---
    d1 = act(dot(z, wd1_ref) + bd1)
    d2 = act(dot(d1, wd2_ref) + bd2)
    xr = dot(d2, wd3_ref) + bd3

    # Two lane-dense, 128-aligned, unmasked stores (no concatenate temp).
    out_ref[:, :in_p] = xr.astype(out_ref.dtype)
    out_ref[:, in_p:] = mulv.astype(out_ref.dtype)


# --------------------------------------------------------------------------
# Wrapper
# --------------------------------------------------------------------------
def _pick_tile_b(batch, tile_b_max, in_p, lat_p, out_w, *,
                 min_grid=2, act_budget_bytes=24 << 20):
    """Pick a batch tile: as large as possible, but keep >= min_grid grid steps
    and keep double-buffered activation tiles inside a v7x-safe VMEM budget."""
    b8 = _round_up(max(batch, 8), 8)
    if b8 <= 128:
        return b8
    cap_grid = _round_up(-(-b8 // min_grid), 128)          # >= min_grid steps
    per_row = 4 * (in_p + lat_p + out_w)                    # f32 bytes per row
    cap_vmem = max(128, (act_budget_bytes // (2 * per_row)) // 128 * 128)
    return int(max(128, min(tile_b_max, cap_grid, cap_vmem)))


def vae_forward(x, eps, params, *, tile_b=512, leaky_relu_alpha=None):
    """x: (B, input_dim) f32, eps: (B, latent_dim) f32 (the randn_like noise)."""
    dims = params["dims"]
    input_dim, latent_dim = dims["input_dim"], dims["latent_dim"]
    in_p, h1_p, h2_p, lat_p = dims["in_p"], dims["h1_p"], dims["h2_p"], dims["lat_p"]

    B = x.shape[0]
    out_w = in_p + 2 * lat_p                      # lane-dense output slab width

    tb = _pick_tile_b(B, tile_b, in_p, lat_p, out_w)
    b_pad = _round_up(B, tb)
    grid = (b_pad // tb,)

    # Zero-pad activations: batch to the tile, features to the padded widths.
    x_p = jnp.zeros((b_pad, in_p), jnp.float32).at[:B, :input_dim].set(x)
    eps_p = jnp.zeros((b_pad, lat_p), jnp.float32).at[:B, :latent_dim].set(eps)

    weights = (params["w1"], params["w2"], params["w_heads"],
               params["wd1"], params["wd2"], params["wd3"], params["b_packed"])

    # Weights/biases: full-array blocks, constant index_map -> DMA'd once and
    # resident in VMEM across all batch tiles.
    resident = lambda arr: pl.BlockSpec(arr.shape, lambda i: (0, 0))

    # Cost estimate (advisory) + explicit VMEM limit (v7x has 64 MiB/TC).
    k_times_n = (in_p * h1_p + h1_p * h2_p + h2_p * 2 * lat_p
                 + lat_p * h2_p + h2_p * h1_p + h1_p * in_p)
    weight_bytes = 2 * k_times_n + 4 * 8 * params["b_packed"].shape[1]
    act_bytes = 4 * b_pad * (in_p + lat_p + out_w)
    cost = pl.CostEstimate(flops=2 * b_pad * k_times_n,
                           transcendentals=b_pad * lat_p,
                           bytes_accessed=act_bytes + weight_bytes)
    tile_act_bytes = 4 * tb * (in_p + lat_p + out_w)
    vmem_limit = int(min(100 << 20,
                         max(32 << 20, weight_bytes + 4 * tile_act_bytes + (8 << 20))))

    kernel = functools.partial(_vae_kernel, lat_p=lat_p, alpha=leaky_relu_alpha)

    out = pl.pallas_call(
        kernel,
        out_shape=jax.ShapeDtypeStruct((b_pad, out_w), jnp.float32),
        grid=grid,
        in_specs=[
            pl.BlockSpec((tb, in_p), lambda i: (i, 0)),     # x tile
            pl.BlockSpec((tb, lat_p), lambda i: (i, 0)),    # eps tile
            *[resident(w) for w in weights],                # resident params
        ],
        out_specs=pl.BlockSpec((tb, out_w), lambda i: (i, 0)),
        compiler_params=pltpu.CompilerParams(
            dimension_semantics=("parallel",),              # shard tiles across TCs (v7x)
            vmem_limit_bytes=vmem_limit),
        cost_estimate=cost,
    )(x_p, eps_p, *weights)

    x_rec = out[:B, :input_dim]
    mu = out[:B, in_p:in_p + latent_dim]
    logvar = out[:B, in_p + lat_p:in_p + lat_p + latent_dim]
    return x_rec, mu, logvar


# --------------------------------------------------------------------------
# Parameters (PyTorch-style init, padded + fused for the kernel)
# --------------------------------------------------------------------------
def _init_linear(key, fan_in, fan_out):
    """PyTorch Linear init: U(-1/sqrt(fan_in), 1/sqrt(fan_in)).
    Weight already transposed to (fan_in, fan_out); bias is (1, fan_out)."""
    kw, kb = jax.random.split(key)
    bound = 1.0 / jnp.sqrt(fan_in)
    w = jax.random.uniform(kw, (fan_in, fan_out), jnp.float32, -bound, bound)
    b = jax.random.uniform(kb, (1, fan_out), jnp.float32, -bound, bound)
    return w, b


def make_params(key, input_dim, hidden_dim1, hidden_dim2, latent_dim):
    keys = jax.random.split(key, 7)
    w1, b1 = _init_linear(keys[0], input_dim, hidden_dim1)      # encoder L1
    w2, b2 = _init_linear(keys[1], hidden_dim1, hidden_dim2)    # encoder L2
    wmu, bmu = _init_linear(keys[2], hidden_dim2, latent_dim)   # mu head
    wlv, blv = _init_linear(keys[3], hidden_dim2, latent_dim)   # logvar head
    wd1, bd1 = _init_linear(keys[4], latent_dim, hidden_dim2)   # decoder L1
    wd2, bd2 = _init_linear(keys[5], hidden_dim2, hidden_dim1)  # decoder L2
    wd3, bd3 = _init_linear(keys[6], hidden_dim1, input_dim)    # decoder L3

    in_p = _round_up(input_dim, 128)
    h1_p = _round_up(hidden_dim1, 128)
    h2_p = _round_up(hidden_dim2, 128)
    lat_p = _round_up(latent_dim, 128)

    def padw(w, rows, cols):
        return jnp.zeros((rows, cols), jnp.float32).at[:w.shape[0], :w.shape[1]].set(w)

    w1_p = padw(w1, in_p, h1_p)
    w2_p = padw(w2, h1_p, h2_p)
    # Fused mu|logvar head with a 128-aligned split point.
    wh_p = jnp.zeros((h2_p, 2 * lat_p), jnp.float32)
    wh_p = wh_p.at[:hidden_dim2, :latent_dim].set(wmu)
    wh_p = wh_p.at[:hidden_dim2, lat_p:lat_p + latent_dim].set(wlv)
    wd1_p = padw(wd1, lat_p, h2_p)
    wd2_p = padw(wd2, h2_p, h1_p)
    wd3_p = padw(wd3, h1_p, in_p)

    # All 6 biases packed into one (8, max_width) f32 buffer, one row per layer.
    max_w = max(in_p, h1_p, h2_p, 2 * lat_p)
    b_packed = jnp.zeros((8, max_w), jnp.float32)
    b_packed = b_packed.at[0, :hidden_dim1].set(b1[0])
    b_packed = b_packed.at[1, :hidden_dim2].set(b2[0])
    b_packed = b_packed.at[2, :latent_dim].set(bmu[0])
    b_packed = b_packed.at[2, lat_p:lat_p + latent_dim].set(blv[0])
    b_packed = b_packed.at[3, :hidden_dim2].set(bd1[0])
    b_packed = b_packed.at[4, :hidden_dim1].set(bd2[0])
    b_packed = b_packed.at[5, :input_dim].set(bd3[0])

    bf16 = jnp.bfloat16
    return {
        # bf16 padded weights for the MXU path (halves weight DMA bytes).
        "w1": w1_p.astype(bf16), "w2": w2_p.astype(bf16), "w_heads": wh_p.astype(bf16),
        "wd1": wd1_p.astype(bf16), "wd2": wd2_p.astype(bf16), "wd3": wd3_p.astype(bf16),
        "b_packed": b_packed,
        "dims": {"input_dim": input_dim, "hidden_dim1": hidden_dim1,
                 "hidden_dim2": hidden_dim2, "latent_dim": latent_dim,
                 "in_p": in_p, "h1_p": h1_p, "h2_p": h2_p, "lat_p": lat_p},
        # Unpadded f32 params for the pure-JAX reference.
        "ref": {"w1": w1, "b1": b1, "w2": w2, "b2": b2, "wmu": wmu, "bmu": bmu,
                "wlv": wlv, "blv": blv, "wd1": wd1, "bd1": bd1,
                "wd2": wd2, "bd2": bd2, "wd3": wd3, "bd3": bd3},
    }


def reference_forward(x, eps, params, leaky_relu_alpha=None):
    """Pure-JAX reference with the same bf16-input / f32-accumulation matmuls."""
    p = params["ref"]
    bf16, f32 = jnp.bfloat16, jnp.float32
    if leaky_relu_alpha is None:
        act = lambda v: jnp.maximum(v, 0.0)
    else:
        act = lambda v: jnp.where(v > 0.0, v, leaky_relu_alpha * v)
    dot = lambda a, w: jnp.dot(a.astype(bf16), w.astype(bf16),
                               preferred_element_type=f32)
    h1 = act(dot(x, p["w1"]) + p["b1"])
    h2 = act(dot(h1, p["w2"]) + p["b2"])
    mu = dot(h2, p["wmu"]) + p["bmu"]
    logvar = dot(h2, p["wlv"]) + p["blv"]
    z = mu + eps * jnp.exp(0.5 * logvar)
    d1 = act(dot(z, p["wd1"]) + p["bd1"])
    d2 = act(dot(d1, p["wd2"]) + p["bd2"])
    xr = dot(d2, p["wd3"]) + p["bd3"]
    return xr, mu, logvar


if __name__ == "__main__":
    # Module dims kept small; batch deliberately NOT a multiple of the batch
    # tile so the padding path is exercised (B=200 -> tile 128 -> grid of 2).
    input_dim, hidden_dim1, hidden_dim2, latent_dim = 32, 64, 32, 16
    batch = 200

    key = jax.random.PRNGKey(0)
    k_params, k_x, k_eps = jax.random.split(key, 3)

    params = make_params(k_params, input_dim, hidden_dim1, hidden_dim2, latent_dim)
    x = jax.random.normal(k_x, (batch, input_dim), jnp.float32)
    # eps ~ N(0, 1): the torch.randn_like reparameterization noise, sampled
    # deterministically in-script and fed to the kernel.
    # TODO(synk): in-kernel pltpu PRNG could generate eps instead of host-side sampling.
    eps = jax.random.normal(k_eps, (batch, latent_dim), jnp.float32)

    x_rec, mu, logvar = vae_forward(x, eps, params)
    jax.block_until_ready((x_rec, mu, logvar))

    # Cross-check against the pure-JAX reference (same bf16 matmul inputs).
    xr_ref, mu_ref, lv_ref = reference_forward(x, eps, params)
    assert x_rec.shape == (batch, input_dim)
    assert mu.shape == (batch, latent_dim) and logvar.shape == (batch, latent_dim)
    assert jnp.allclose(x_rec, xr_ref, atol=2e-3, rtol=2e-3)
    assert jnp.allclose(mu, mu_ref, atol=2e-3, rtol=2e-3)
    assert jnp.allclose(logvar, lv_ref, atol=2e-3, rtol=2e-3)

    print("KERNEL_OK")
</pallas_src>

<mosaic_0001>
module attributes {stable_mosaic.version = 11 : i64} {
  func.func @_vae_kernel(%arg0: i32, %arg1: memref<128x128xf32, #tpu.memory_space<vmem>>, %arg2: memref<128x128xf32, #tpu.memory_space<vmem>>, %arg3: memref<128x128xbf16, #tpu.memory_space<vmem>>, %arg4: memref<128x128xbf16, #tpu.memory_space<vmem>>, %arg5: memref<128x256xbf16, #tpu.memory_space<vmem>>, %arg6: memref<128x128xbf16, #tpu.memory_space<vmem>>, %arg7: memref<128x128xbf16, #tpu.memory_space<vmem>>, %arg8: memref<128x128xbf16, #tpu.memory_space<vmem>>, %arg9: memref<8x256xf32, #tpu.memory_space<vmem>>, %arg10: memref<128x384xf32, #tpu.memory_space<vmem>>) attributes {dimension_semantics = [#tpu.dimension_semantics<parallel>], iteration_bounds = array<i64: 2>, scalar_prefetch = 0 : i64, scratch_operands = 0 : i64, tpu.core_type = #tpu.core_type<tc>, window_params = [{transform_indices = @transform_0, window_bounds = array<i64: 128, 128>}, {transform_indices = @transform_1, window_bounds = array<i64: 128, 128>}, {pipeline_mode = #tpu.pipeline_mode<synchronous>, transform_indices = @transform_2, window_bounds = array<i64: 128, 128>}, {pipeline_mode = #tpu.pipeline_mode<synchronous>, transform_indices = @transform_3, window_bounds = array<i64: 128, 128>}, {pipeline_mode = #tpu.pipeline_mode<synchronous>, transform_indices = @transform_4, window_bounds = array<i64: 128, 256>}, {pipeline_mode = #tpu.pipeline_mode<synchronous>, transform_indices = @transform_5, window_bounds = array<i64: 128, 128>}, {pipeline_mode = #tpu.pipeline_mode<synchronous>, transform_indices = @transform_6, window_bounds = array<i64: 128, 128>}, {pipeline_mode = #tpu.pipeline_mode<synchronous>, transform_indices = @transform_7, window_bounds = array<i64: 128, 128>}, {pipeline_mode = #tpu.pipeline_mode<synchronous>, transform_indices = @transform_8, window_bounds = array<i64: 8, 256>}, {transform_indices = @transform_9, window_bounds = array<i64: 128, 384>}]} {
    %c0 = arith.constant 0 : index
    %c0_0 = arith.constant 0 : index
    %0 = vector.load %arg9[%c0, %c0_0] : memref<8x256xf32, #tpu.memory_space<vmem>>, vector<1x128xf32>
    %c1 = arith.constant 1 : index
    %c0_1 = arith.constant 0 : index
    %1 = vector.load %arg9[%c1, %c0_1] : memref<8x256xf32, #tpu.memory_space<vmem>>, vector<1x128xf32>
    %c2 = arith.constant 2 : index
    %c0_2 = arith.constant 0 : index
    %2 = vector.load %arg9[%c2, %c0_2] : memref<8x256xf32, #tpu.memory_space<vmem>>, vector<1x256xf32>
    %c3 = arith.constant 3 : index
    %c0_3 = arith.constant 0 : index
    %3 = vector.load %arg9[%c3, %c0_3] : memref<8x256xf32, #tpu.memory_space<vmem>>, vector<1x128xf32>
    %c4 = arith.constant 4 : index
    %c0_4 = arith.constant 0 : index
    %4 = vector.load %arg9[%c4, %c0_4] : memref<8x256xf32, #tpu.memory_space<vmem>>, vector<1x128xf32>
    %c5 = arith.constant 5 : index
    %c0_5 = arith.constant 0 : index
    %5 = vector.load %arg9[%c5, %c0_5] : memref<8x256xf32, #tpu.memory_space<vmem>>, vector<1x128xf32>
    %c0_6 = arith.constant 0 : index
    %c0_7 = arith.constant 0 : index
    %6 = vector.load %arg1[%c0_6, %c0_7] : memref<128x128xf32, #tpu.memory_space<vmem>>, vector<128x128xf32>
    %7 = arith.truncf %6 : vector<128x128xf32> to vector<128x128xbf16>
    %c0_8 = arith.constant 0 : index
    %c0_9 = arith.constant 0 : index
    %8 = vector.load %arg3[%c0_8, %c0_9] : memref<128x128xbf16, #tpu.memory_space<vmem>>, vector<128x128xbf16>
    %cst = arith.constant dense<0.000000e+00> : vector<128x128xf32>
    %9 = tpu.matmul %7, %8, %cst {dimension_numbers = #tpu.dot_dimension_numbers<[1], [0], [0], [1], [0, 0, 1, 1], [], []>} : vector<128x128xbf16>, vector<128x128xbf16>, vector<128x128xf32> -> vector<128x128xf32>
    %10 = vector.broadcast %0 : vector<1x128xf32> to vector<128x128xf32>
    %11 = arith.addf %9, %10 : vector<128x128xf32>
    %cst_10 = arith.constant 0.000000e+00 : f32
    %12 = vector.broadcast %cst_10 : f32 to vector<128x128xf32>
    %13 = arith.maximumf %11, %12 : vector<128x128xf32>
    %14 = arith.truncf %13 : vector<128x128xf32> to vector<128x128xbf16>
    %c0_11 = arith.constant 0 : index
    %c0_12 = arith.constant 0 : index
    %15 = vector.load %arg4[%c0_11, %c0_12] : memref<128x128xbf16, #tpu.memory_space<vmem>>, vector<128x128xbf16>
    %cst_13 = arith.constant dense<0.000000e+00> : vector<128x128xf32>
    %16 = tpu.matmul %14, %15, %cst_13 {dimension_numbers = #tpu.dot_dimension_numbers<[1], [0], [0], [1], [0, 0, 1, 1], [], []>} : vector<128x128xbf16>, vector<128x128xbf16>, vector<128x128xf32> -> vector<128x128xf32>
    %17 = vector.broadcast %1 : vector<1x128xf32> to vector<128x128xf32>
    %18 = arith.addf %16, %17 : vector<128x128xf32>
    %cst_14 = arith.constant 0.000000e+00 : f32
    %19 = vector.broadcast %cst_14 : f32 to vector<128x128xf32>
    %20 = arith.maximumf %18, %19 : vector<128x128xf32>
    %21 = arith.truncf %20 : vector<128x128xf32> to vector<128x128xbf16>
    %c0_15 = arith.constant 0 : index
    %c0_16 = arith.constant 0 : index
    %22 = vector.load %arg5[%c0_15, %c0_16] : memref<128x256xbf16, #tpu.memory_space<vmem>>, vector<128x256xbf16>
    %cst_17 = arith.constant dense<0.000000e+00> : vector<128x256xf32>
    %23 = tpu.matmul %21, %22, %cst_17 {dimension_numbers = #tpu.dot_dimension_numbers<[1], [0], [0], [1], [0, 0, 1, 1], [], []>} : vector<128x128xbf16>, vector<128x256xbf16>, vector<128x256xf32> -> vector<128x256xf32>
    %24 = vector.broadcast %2 : vector<1x256xf32> to vector<128x256xf32>
    %25 = arith.addf %23, %24 : vector<128x256xf32>
    %26 = vector.extract_strided_slice %25 {offsets = [0, 0], sizes = [128, 128], strides = [1, 1]} : vector<128x256xf32> to vector<128x128xf32>
    %27 = vector.extract_strided_slice %25 {offsets = [0, 128], sizes = [128, 128], strides = [1, 1]} : vector<128x256xf32> to vector<128x128xf32>
    %c0_18 = arith.constant 0 : index
    %c0_19 = arith.constant 0 : index
    %28 = vector.load %arg2[%c0_18, %c0_19] : memref<128x128xf32, #tpu.memory_space<vmem>>, vector<128x128xf32>
    %cst_20 = arith.constant 5.000000e-01 : f32
    %29 = vector.broadcast %cst_20 : f32 to vector<128x128xf32>
    %30 = arith.mulf %29, %27 : vector<128x128xf32>
    %31 = math.exp %30 : vector<128x128xf32>
    %32 = arith.mulf %28, %31 : vector<128x128xf32>
    %33 = arith.addf %26, %32 : vector<128x128xf32>
    %34 = arith.truncf %33 : vector<128x128xf32> to vector<128x128xbf16>
    %c0_21 = arith.constant 0 : index
    %c0_22 = arith.constant 0 : index
    %35 = vector.load %arg6[%c0_21, %c0_22] : memref<128x128xbf16, #tpu.memory_space<vmem>>, vector<128x128xbf16>
    %cst_23 = arith.constant dense<0.000000e+00> : vector<128x128xf32>
    %36 = tpu.matmul %34, %35, %cst_23 {dimension_numbers = #tpu.dot_dimension_numbers<[1], [0], [0], [1], [0, 0, 1, 1], [], []>} : vector<128x128xbf16>, vector<128x128xbf16>, vector<128x128xf32> -> vector<128x128xf32>
    %37 = vector.broadcast %3 : vector<1x128xf32> to vector<128x128xf32>
    %38 = arith.addf %36, %37 : vector<128x128xf32>
    %cst_24 = arith.constant 0.000000e+00 : f32
    %39 = vector.broadcast %cst_24 : f32 to vector<128x128xf32>
    %40 = arith.maximumf %38, %39 : vector<128x128xf32>
    %41 = arith.truncf %40 : vector<128x128xf32> to vector<128x128xbf16>
    %c0_25 = arith.constant 0 : index
    %c0_26 = arith.constant 0 : index
    %42 = vector.load %arg7[%c0_25, %c0_26] : memref<128x128xbf16, #tpu.memory_space<vmem>>, vector<128x128xbf16>
    %cst_27 = arith.constant dense<0.000000e+00> : vector<128x128xf32>
    %43 = tpu.matmul %41, %42, %cst_27 {dimension_numbers = #tpu.dot_dimension_numbers<[1], [0], [0], [1], [0, 0, 1, 1], [], []>} : vector<128x128xbf16>, vector<128x128xbf16>, vector<128x128xf32> -> vector<128x128xf32>
    %44 = vector.broadcast %4 : vector<1x128xf32> to vector<128x128xf32>
    %45 = arith.addf %43, %44 : vector<128x128xf32>
    %cst_28 = arith.constant 0.000000e+00 : f32
    %46 = vector.broadcast %cst_28 : f32 to vector<128x128xf32>
    %47 = arith.maximumf %45, %46 : vector<128x128xf32>
    %48 = arith.truncf %47 : vector<128x128xf32> to vector<128x128xbf16>
    %c0_29 = arith.constant 0 : index
    %c0_30 = arith.constant 0 : index
    %49 = vector.load %arg8[%c0_29, %c0_30] : memref<128x128xbf16, #tpu.memory_space<vmem>>, vector<128x128xbf16>
    %cst_31 = arith.constant dense<0.000000e+00> : vector<128x128xf32>
    %50 = tpu.matmul %48, %49, %cst_31 {dimension_numbers = #tpu.dot_dimension_numbers<[1], [0], [0], [1], [0, 0, 1, 1], [], []>} : vector<128x128xbf16>, vector<128x128xbf16>, vector<128x128xf32> -> vector<128x128xf32>
    %51 = vector.broadcast %5 : vector<1x128xf32> to vector<128x128xf32>
    %52 = arith.addf %50, %51 : vector<128x128xf32>
    %c0_32 = arith.constant 0 : index
    %c0_33 = arith.constant 0 : index
    %53 = vector.load %arg10[%c0_32, %c0_33] : memref<128x384xf32, #tpu.memory_space<vmem>>, vector<128x128xf32>
    tpu.vector_store %arg10[%c0_32, %c0_33], %52 {strides = array<i32>} : memref<128x384xf32, #tpu.memory_space<vmem>>, vector<128x128xf32>,
    %c0_34 = arith.constant 0 : index
    %c128 = arith.constant 128 : index
    %54 = vector.load %arg10[%c0_34, %c128] : memref<128x384xf32, #tpu.memory_space<vmem>>, vector<128x256xf32>
    tpu.vector_store %arg10[%c0_34, %c128], %25 {strides = array<i32>} : memref<128x384xf32, #tpu.memory_space<vmem>>, vector<128x256xf32>,
    return
  }
  func.func @transform_0(%arg0: i32) -> (i32, i32) {
    %c0_i32 = arith.constant 0 : i32
    %c0_i32_0 = arith.constant 0 : i32
    return %arg0, %c0_i32 : i32, i32
  }
  func.func @transform_1(%arg0: i32) -> (i32, i32) {
    %c0_i32 = arith.constant 0 : i32
    %c0_i32_0 = arith.constant 0 : i32
    return %arg0, %c0_i32 : i32, i32
  }
  func.func @transform_2(%arg0: i32) -> (i32, i32) {
    %c0_i32 = arith.constant 0 : i32
    %c0_i32_0 = arith.constant 0 : i32
    %c0_i32_1 = arith.constant 0 : i32
    return %c0_i32, %c0_i32_0 : i32, i32
  }
  func.func @transform_3(%arg0: i32) -> (i32, i32) {
    %c0_i32 = arith.constant 0 : i32
    %c0_i32_0 = arith.constant 0 : i32
    %c0_i32_1 = arith.constant 0 : i32
    return %c0_i32, %c0_i32_0 : i32, i32
  }
  func.func @transform_4(%arg0: i32) -> (i32, i32) {
    %c0_i32 = arith.constant 0 : i32
    %c0_i32_0 = arith.constant 0 : i32
    %c0_i32_1 = arith.constant 0 : i32
    return %c0_i32, %c0_i32_0 : i32, i32
  }
  func.func @transform_5(%arg0: i32) -> (i32, i32) {
    %c0_i32 = arith.constant 0 : i32
    %c0_i32_0 = arith.constant 0 : i32
    %c0_i32_1 = arith.constant 0 : i32
    return %c0_i32, %c0_i32_0 : i32, i32
  }
  func.func @transform_6(%arg0: i32) -> (i32, i32) {
    %c0_i32 = arith.constant 0 : i32
    %c0_i32_0 = arith.constant 0 : i32
    %c0_i32_1 = arith.constant 0 : i32
    return %c0_i32, %c0_i32_0 : i32, i32
  }
  func.func @transform_7(%arg0: i32) -> (i32, i32) {
    %c0_i32 = arith.constant 0 : i32
    %c0_i32_0 = arith.constant 0 : i32
    %c0_i32_1 = arith.constant 0 : i32
    return %c0_i32, %c0_i32_0 : i32, i32
  }
  func.func @transform_8(%arg0: i32) -> (i32, i32) {
    %c0_i32 = arith.constant 0 : i32
    %c0_i32_0 = arith.constant 0 : i32
    %c0_i32_1 = arith.constant 0 : i32
    return %c0_i32, %c0_i32_0 : i32, i32
  }
  func.func @transform_9(%arg0: i32) -> (i32, i32) {
    %c0_i32 = arith.constant 0 : i32
    %c0_i32_0 = arith.constant 0 : i32
    return %arg0, %c0_i32 : i32, i32
  }
}

</mosaic_0001>

<bundles_post_ra>
// kernel: tpu_custom_call.1
= control target key start
LH: loop header
LB: loop body
LE: loop exit
PB: predicated region body
PF: predicated region fallthrough
CT: control target
= control target key end

     0   :  { %s3511_s0 = inlined_call_operand.hbm [shape: f32[256,128], index: 0, kind: input, shape index: {}]   ;;  %s3512_s1 = inlined_call_operand.hbm [shape: f32[256,128], index: 1, kind: input, shape index: {}]   ;;  %s3513_s2 = inlined_call_operand.hbm [shape: bf16[128,128], index: 2, kind: input, shape index: {}]   ;;  %s3514_s3 = inlined_call_operand.hbm [shape: bf16[128,128], index: 3, kind: input, shape index: {}]   ;;  %s3515_s4 = inlined_call_operand.hbm [shape: bf16[128,256], index: 4, kind: input, shape index: {}]   ;;  %s3516_s5 = inlined_call_operand.hbm [shape: bf16[128,128], index: 5, kind: input, shape index: {}]   ;;  %s3517_s6 = inlined_call_operand.hbm [shape: bf16[128,128], index: 6, kind: input, shape index: {}]   ;;  %s3518_s7 = inlined_call_operand.hbm [shape: bf16[128,128], index: 7, kind: input, shape index: {}]   ;;  %s3519_s8 = inlined_call_operand.vmem [shape: f32[8,256], index: 8, kind: input, shape index: {}]   ;;  %s3520_s9 = inlined_call_operand.hbm [shape: f32[256,384], index: 9, kind: output, shape index: {}]  }
   0x1   :  { %3533 = sst [smem:[#allocation24_spill]] %s3511_s0 }
   0x2   :  { %3534 = sst [smem:[#allocation25_spill]] %s3513_s2 }
   0x3   :  { %3535 = sst [smem:[#allocation26_spill]] %s3514_s3 }
   0x4   :  { %3536 = sst [smem:[#allocation27_spill]] %s3515_s4 }
   0x5   :  { %3537 = sst [smem:[#allocation28_spill]] %s3516_s5 }
   0x6   :  { %3538 = sst [smem:[#allocation29_spill]] %s3520_s9 }
   0x7   :  { %14 = vsyncpa [#allocation3], 0 }
   0x8   :  { %16 = vsyncpa [#allocation3 + $0x1], 0 }
   0x9   :  { %17 = vsyncpa [#allocation6], 0 }
   0xa   :  { %19 = vsyncpa [#allocation6 + $0x1], 0 }
   0xb   :  { %20 = vsyncpa [#allocation9], 0 }
   0xc   :  { %21 = vsyncpa [#allocation12], 0 }
   0xd   :  { %22 = vsyncpa [#allocation15], 0 }
   0xe   :  { %23 = vsyncpa [#allocation4], 0 }
   0xf   :  { %25 = vsyncpa [#allocation4 + $0x1], 0  ;;  %s2897_s30 = smov 0   ;;  %s2899_s10 = smov 0  }
  0x10   :  { %s2901_s11 = smov 0   ;;  %s2903_s12 = smov 0  }
  0x11 LB: > { %s2831_s13 = smov [#allocation7]   ;;  %s2918_s15 = sadd.s32 4294967295, %s2829_s12   ;;  %s2829_s12 = sphi %s2903_s12, %s3573_s12   ;;  %s2825_s11 = sphi %s2901_s11, %s3572_s11   ;;  %s2821_s10 = sphi %s2899_s10, %s3571_s10   ;;  %s2817_s30 = sphi %s2897_s30, %s3570_s30  }
  0x12   : > { %s273_s14 = sshll.u32 %s2831_s13, 4  ;;  %p1955_p0 = scmp.ge.s32.totalorder %s2829_s12, 1  ;;  %s2923_s14 = int_to_ptr.vmem [resolvable:$true] %s273_s14 }
  0x13   : > { %p3522_p1 = scmp.eq.s32.totalorder %s2918_s15, 0  ;;  %p261_p2 = scmp.lt.s32.totalorder %s2829_s12, 3 }
  0x14   : > { %s2832_s17 = smov [#allocation8]   ;;  %s2833_s20 = smov [#allocation11]  }
  0x15   : > { %p2925_p3 = pnand %p1955_p0, %p261_p2  ;;  %s286_s18 = sshll.u32 %s2832_s17, 4  ;;  %s2938_s18 = int_to_ptr.vmem [resolvable:$true] %s286_s18 }
  0x16   : > { %s312_s21 = sshll.u32 %s2833_s20, 4  ;;  %s3541_s2 = sld [smem:[#allocation25_spill]]  ;;  %s2940_s21 = int_to_ptr.vmem [resolvable:$true] %s312_s21 }
  0x17   : > { %s3539_s16 = scalar_select %p2925_p3, 1, 0 }
  0x18   : > { %p2330_p5 = pneg %p2925_p3 }
  0x1a   : > { %p2934_p6 = pnand %p2330_p5, %p3522_p1 }
  0x1c   : > { %s2515_s24 = scalar_lea.hbm %s3541_s2, 1024  ;;  %p2950_p8 = pneg %p2934_p6 }
  0x1d   : > { %p2516_p7 = scmp.ne.s32.totalorder %s3541_s2, %s2515_s24  ;;  %p2522_p11 = scmp.lt.u32.totalorder %s2515_s24, %s3541_s2 }
  0x1f   : > { %p2518_p9 = pnand %p2950_p8, %p2516_p7 }
  0x21   : > { %p2519_p10 = pneg %p2518_p9 }
  0x23   : > { %p2524_p12 = pnand %p2522_p11, %p2519_p10 }
  0x25   : > { %2527 = shalt.err (!%p2524_p12)
}
  0x26   : > { %s2528_s13 = scalar_lea.vmem %s2923_s14, 1024  ;;  %p2536_p5 = scmp.lt.s32.totalorder %s2923_s14, %s2923_s14 }
  0x27   : > { %p2529_p13 = scmp.ne.s32.totalorder %s2923_s14, %s2528_s13  ;;  %p2537_p4 = scmp.lt.s32.totalorder %s2528_s13, %s2528_s13 }
  0x29   : > { %p2531_p0 = pnand %p2529_p13, %p2950_p8  ;;  %p2538_p7 = por %p2537_p4, %p2536_p5 }
  0x2b   : > { %p2532_p2 = pneg %p2531_p0 }
  0x2d   : > { %p2539_p9 = pnand %p2538_p7, %p2532_p2 }
  0x2f   : > { %2542 = shalt.err (!%p2539_p9)
}
  0x30   : > { %s3524_s17 = smov 64   ;;  %s3526_s20 = smov 4  }
  0x31   : > { %2333 = dma.hbm_to_vmem [thread:$0]  (!%p2934_p6), %s3541_s2, 1024, %s2923_s14, [#allocation6], %s3524_s17, %s3524_s17, %s3526_s20  }
  0x32   : > { %s3543_s3 = sld [smem:[#allocation26_spill]] }
  0x38   : > { %s2543_s26 = scalar_lea.hbm %s3543_s3, 1024 }
  0x39   : > { %p2544_p4 = scmp.ne.s32.totalorder %s3543_s3, %s2543_s26  ;;  %p2550_p12 = scmp.lt.u32.totalorder %s2543_s26, %s3543_s3 }
  0x3b   : > { %p2546_p10 = pnand %p2544_p4, %p2950_p8 }
  0x3d   : > { %p2547_p11 = pneg %p2546_p10 }
  0x3f   : > { %p2552_p13 = pnand %p2550_p12, %p2547_p11 }
  0x41   : > { %2555 = shalt.err (!%p2552_p13)
}
  0x42   : > { %s2556_s14 = scalar_lea.vmem %s2938_s18, 1024  ;;  %p2564_p7 = scmp.lt.s32.totalorder %s2938_s18, %s2938_s18 }
  0x43   : > { %p2557_p0 = scmp.ne.s32.totalorder %s2938_s18, %s2556_s14  ;;  %p2565_p9 = scmp.lt.s32.totalorder %s2556_s14, %s2556_s14 }
  0x45   : > { %p2559_p2 = pnand %p2557_p0, %p2950_p8  ;;  %p2566_p4 = por %p2565_p9, %p2564_p7 }
  0x47   : > { %p2560_p5 = pneg %p2559_p2 }
  0x49   : > { %p2567_p10 = pnand %p2566_p4, %p2560_p5 }
  0x4b   : > { %2570 = shalt.err (!%p2567_p10)
}
  0x4c   : > { %2336 = dma.hbm_to_vmem [thread:$0]  (!%p2934_p6), %s3543_s3, 1024, %s2938_s18, [#allocation9], %s3524_s17, %s3524_s17, %s3526_s20  }
  0x4d   : > { %s3544_s5 = sld [smem:[#allocation28_spill]] }
  0x53   : > { %s2571_s25 = scalar_lea.hbm %s3544_s5, 1024 }
  0x54   : > { %p2572_p11 = scmp.ne.s32.totalorder %s3544_s5, %s2571_s25  ;;  %p2578_p0 = scmp.lt.u32.totalorder %s2571_s25, %s3544_s5 }
  0x56   : > { %p2574_p12 = pnand %p2572_p11, %p2950_p8 }
  0x58   : > { %p2575_p13 = pneg %p2574_p12 }
  0x5a   : > { %p2580_p2 = pnand %p2578_p0, %p2575_p13 }
  0x5c   : > { %2583 = shalt.err (!%p2580_p2)
}
  0x5d   : > { %s2584_s18 = scalar_lea.vmem %s2940_s21, 1024  ;;  %p2592_p4 = scmp.lt.s32.totalorder %s2940_s21, %s2940_s21 }
  0x5e   : > { %p2585_p5 = scmp.ne.s32.totalorder %s2940_s21, %s2584_s18  ;;  %p2593_p10 = scmp.lt.s32.totalorder %s2584_s18, %s2584_s18 }
  0x60   : > { %p2587_p7 = pnand %p2585_p5, %p2950_p8  ;;  %p2594_p11 = por %p2593_p10, %p2592_p4 }
  0x62   : > { %p2588_p9 = pneg %p2587_p7 }
  0x64   : > { %p2595_p12 = pnand %p2594_p11, %p2588_p9 }
  0x66   : > { %2598 = shalt.err (!%p2595_p12)
}
  0x67   : > { %2342 = dma.hbm_to_vmem [thread:$0]  (!%p2934_p6), %s3544_s5, 1024, %s2940_s21, [#allocation12], %s3524_s17, %s3524_s17, %s3526_s20  }
  0x68   : > { %s2836_s22 = smov [#allocation10]   ;;  %s3545_s4 = sld [smem:[#allocation27_spill]] }
  0x69   : > { %s299_s23 = sshll.u32 %s2836_s22, 4  ;;  %s300_s23 = int_to_ptr.vmem [resolvable:$true] %s299_s23 }
  0x6e   : > { %s2599_s26 = scalar_lea.hbm %s3545_s4, 2048 }
  0x6f   : > { %p2600_p13 = scmp.ne.s32.totalorder %s3545_s4, %s2599_s26  ;;  %p2606_p5 = scmp.lt.u32.totalorder %s2599_s26, %s3545_s4 }
  0x71   : > { %p2602_p0 = pnand %p2600_p13, %p2950_p8 }
  0x73   : > { %p2603_p2 = pneg %p2602_p0 }
  0x75   : > { %p2608_p7 = pnand %p2606_p5, %p2603_p2 }
  0x77   : > { %2611 = shalt.err (!%p2608_p7)
}
  0x78   : > { %s2612_s21 = scalar_lea.vmem %s300_s23, 2048  ;;  %p2620_p11 = scmp.lt.s32.totalorder %s300_s23, %s300_s23 }
  0x79   : > { %p2613_p9 = scmp.ne.s32.totalorder %s300_s23, %s2612_s21  ;;  %p2621_p12 = scmp.lt.s32.totalorder %s2612_s21, %s2612_s21 }
  0x7b   : > { %p2615_p4 = pnand %p2613_p9, %p2950_p8  ;;  %p2622_p1 = por %p2621_p12, %p2620_p11 }
  0x7d   : > { %p2616_p10 = pneg %p2615_p4 }
  0x7f   : > { %p2623_p3 = pnand %p2622_p1, %p2616_p10 }
  0x81   : > { %2626 = shalt.err (!%p2623_p3)
}
  0x82   : > { %s3528_s14 = smov 128   ;;  %s3530_s9 = smov 8  }
  0x83   : > { %2339 = dma.hbm_to_vmem [thread:$0]  (!%p2934_p6), %s3545_s4, 2048, %s300_s23, [#allocation9], %s3528_s14, %s3528_s14, %s3530_s9  }
  0x84   : > { %s2839_s25 = smov [#allocation13]   ;;  %s2840_s28 = smov [#allocation14]  }
  0x85   : > { %s325_s26 = sshll.u32 %s2839_s25, 4  ;;  %s338_s29 = sshll.u32 %s2840_s28, 4  ;;  %s326_s26 = int_to_ptr.vmem [resolvable:$true] %s325_s26  ;;  %s3047_s29 = int_to_ptr.vmem [resolvable:$true] %s338_s29 }
  0x86   : > { %s2627_s21 = scalar_lea.hbm %s3517_s6, 1024 }
  0x87   : > { %p2628_p1 = scmp.ne.s32.totalorder %s3517_s6, %s2627_s21  ;;  %p2634_p0 = scmp.lt.u32.totalorder %s2627_s21, %s3517_s6 }
  0x89   : > { %p2630_p3 = pnand %p2628_p1, %p2950_p8 }
  0x8b   : > { %p2631_p13 = pneg %p2630_p3 }
  0x8d   : > { %p2636_p2 = pnand %p2634_p0, %p2631_p13 }
  0x8f   : > { %2639 = shalt.err (!%p2636_p2)
}
  0x90   : > { %s2640_s24 = scalar_lea.vmem %s326_s26, 1024  ;;  %p2648_p4 = scmp.lt.s32.totalorder %s326_s26, %s326_s26 }
  0x91   : > { %p2641_p5 = scmp.ne.s32.totalorder %s326_s26, %s2640_s24  ;;  %p2649_p10 = scmp.lt.s32.totalorder %s2640_s24, %s2640_s24 }
  0x93   : > { %p2643_p7 = pnand %p2641_p5, %p2950_p8  ;;  %p2650_p11 = por %p2649_p10, %p2648_p4 }
  0x95   : > { %p2644_p9 = pneg %p2643_p7 }
  0x97   : > { %p2651_p12 = pnand %p2650_p11, %p2644_p9 }
  0x99   : > { %2654 = shalt.err (!%p2651_p12)
}
  0x9a   : > { %s3546_s17 = smov 4   ;;  %s3547_s20 = smov 64  }
  0x9b   : > { %2345 = dma.hbm_to_vmem [thread:$0]  (!%p2934_p6), %s3517_s6, 1024, %s326_s26, [#allocation12], %s3547_s20, %s3547_s20, %s3546_s17  }
  0x9c   : > { %s2655_s21 = scalar_lea.hbm %s3518_s7, 1024 }
  0x9d   : > { %p2656_p1 = scmp.ne.s32.totalorder %s3518_s7, %s2655_s21  ;;  %p2662_p0 = scmp.lt.u32.totalorder %s2655_s21, %s3518_s7 }
  0x9f   : > { %p2658_p3 = pnand %p2656_p1, %p2950_p8 }
  0xa1   : > { %p2659_p13 = pneg %p2658_p3 }
  0xa3   : > { %p2664_p2 = pnand %p2662_p0, %p2659_p13 }
  0xa5   : > { %2667 = shalt.err (!%p2664_p2)
}
  0xa6   : > { %s2668_s26 = scalar_lea.vmem %s3047_s29, 1024  ;;  %p2676_p4 = scmp.lt.s32.totalorder %s3047_s29, %s3047_s29 }
  0xa7   : > { %p2669_p5 = scmp.ne.s32.totalorder %s3047_s29, %s2668_s26  ;;  %p2677_p10 = scmp.lt.s32.totalorder %s2668_s26, %s2668_s26 }
  0xa9   : > { %p2671_p7 = pnand %p2669_p5, %p2950_p8  ;;  %p2678_p11 = por %p2677_p10, %p2676_p4 }
  0xab   : > { %p2672_p9 = pneg %p2671_p7 }
  0xad   : > { %p2679_p12 = pnand %p2678_p11, %p2672_p9 }
  0xaf   : > { %2682 = shalt.err (!%p2679_p12)
}
  0xb0   : > { %2348 = dma.hbm_to_vmem [thread:$0]  (!%p2934_p6), %s3518_s7, 1024, %s3047_s29, [#allocation15], %s3547_s20, %s3547_s20, %s3546_s17  }
  0xb1   : > { %s1954_s19 = sadd.s32 4294967294, %s2829_s12   ;;  %s3098_s27 = sadd.s32 1, %s2829_s12  }
  0xb2   : > { %s35_s28 = ssub.s32 %s2829_s12, %s3098_s27  ;;  %s38_s13 = sadd.s32 1, %s2825_s11 }
  0xb3   : > { %p36_p8 = scmp.eq.s32.totalorder %s35_s28, 0  ;;  %p45_p1 = scmp.ne.s32.totalorder %s2825_s11, %s2821_s10 }
  0xb4   : > { %p46_p3 = scmp.eq.s32.totalorder %s2829_s12, 0  ;;  %p51_p13 = scmp.ne.s32.totalorder %s2821_s10, %s2817_s30 }
  0xb5   : > { %s3109_s18 = scalar_select %p36_p8, %s2825_s11, %s38_s13  }
  0xb6   : > { %p3111_p0 = por %p46_p3, %p45_p1  ;;  %p3549_p2 = scmp.eq.s32.totalorder %s2918_s15, 0 }
  0xb7   : > { %p248_p5 = scmp.eq.s32.totalorder %s2918_s15, 1  ;;  %p254_p7 = scmp.eq.s32.totalorder %s1954_s19, 1 }
  0xb8   : > { %p3117_p6 = por %p3549_p2, %p51_p13  ;;  %p2366_p9 = scmp.lt.s32.totalorder %s2829_s12, 2 }
  0xb9   : > { %s355_s17 = sand.u32 1, %s2825_s11   ;;  %p3124_p4 = por %p248_p5, %p45_p1 }
  0xba   : > { %p3128_p10 = por %p254_p7, %p51_p13  ;;  %s1963_s23 = sshll.u32 %s355_s17, 7 }
  0xbb   : > { %s3551_s20 = scalar_select %p3124_p4, 1, 0 }
  0xbc   : > { %s3552_s22 = scalar_select %p3128_p10, 1, 0 }
  0xbd   : > { %s2040_s24 = sshll.u32 %s2829_s12, 11  ;;  %s3553_s0 = sld [smem:[#allocation24_spill]] }
  0xbe   : > { %s359_s19 = scalar_lea.vmem [#allocation2], %s1963_s23  ;;  %p3142_p11 = pnand %p2366_p9, %p3111_p0 }
  0xbf   : > { %s366_s28 = sshll.u32 %s359_s19, 4  ;;  %s3149_s26 = scalar_lea.hbm %s3512_s1, %s2040_s24  ;;  %s3138_s28 = int_to_ptr.vmem [resolvable:$true] %s366_s28 }
  0xc0   : > { %s380_s14 = scalar_lea.vmem [#allocation5], %s1963_s23  ;;  %s3153_s4 = scalar_lea.sflag [#allocation3], %s355_s17 }
  0xc1   : > { %s3151_s3 = sshll.u32 %s380_s14, 4  ;;  %p2685_p8 = pneg %p3142_p11  ;;  %s3185_s3 = int_to_ptr.vmem [resolvable:$true] %s3151_s3 }
  0xc3   : > { %s3136_s25 = scalar_lea.hbm %s3553_s0, %s2040_s24  ;;  %s2688_s2 = scalar_lea.hbm %s3553_s0, 4096 }
  0xc4   : > { %s2683_s19 = scalar_lea.hbm %s3136_s25, 2048  ;;  %p2689_p13 = scmp.lt.u32.totalorder %s3136_s25, %s3553_s0 }
  0xc5   : > { %p2684_p12 = scmp.ne.s32.totalorder %s3136_s25, %s2683_s19  ;;  %p2690_p0 = scmp.lt.u32.totalorder %s2688_s2, %s2683_s19 }
  0xc6   : > { %p2692_p5 = scmp.lt.u32.totalorder %s2683_s19, %s3136_s25 }
  0xc7   : > { %p2686_p1 = pnand %p2685_p8, %p2684_p12  ;;  %p2691_p2 = por %p2690_p0, %p2689_p13 }
  0xc9   : > { %p2687_p3 = pneg %p2686_p1  ;;  %p2693_p7 = por %p2692_p5, %p2691_p2 }
  0xcb   : > { %p2694_p9 = pnand %p2693_p7, %p2687_p3 }
  0xcd   : > { %2697 = shalt.err (!%p2694_p9)
}
  0xce   : > { %s2698_s17 = scalar_lea.vmem %s3138_s28, 2048  ;;  %s2841_s5 = smov [#allocation2]  }
  0xcf   : > { %p2699_p12 = scmp.ne.s32.totalorder %s3138_s28, %s2698_s17  ;;  %s2703_s23 = sshll.u32 %s2841_s5, 4  ;;  %s2704_s23 = int_to_ptr.vmem [resolvable:$false] %s2703_s23 }
  0xd0   : > { %s2705_s14 = scalar_lea.vmem %s2704_s23, 4096  ;;  %p2706_p4 = scmp.lt.s32.totalorder %s3138_s28, %s2704_s23 }
  0xd1   : > { %p2701_p1 = pnand %p2699_p12, %p2685_p8  ;;  %p2707_p13 = scmp.lt.s32.totalorder %s2705_s14, %s2698_s17 }
  0xd3   : > { %p2702_p10 = pneg %p2701_p1  ;;  %p2708_p0 = por %p2707_p13, %p2706_p4 }
  0xd5   : > { %p2709_p2 = pnand %p2708_p0, %p2702_p10 }
  0xd7   : > { %2712 = shalt.err (!%p2709_p2)
}
  0xd8   : > { %s3555_s19 = smov 8   ;;  %s3556_s21 = smov 128  }
  0xd9   : > { %2352 = dma.hbm_to_vmem [thread:$0]  (!%p3142_p11), %s3136_s25, 2048, %s3138_s28, %s3153_s4, %s3556_s21, %s3556_s21, %s3555_s19  }
  0xda   : > { %s376_s2 = sand.u32 1, %s2829_s12   ;;  %s2713_s24 = scalar_lea.hbm %s3149_s26, 2048 }
  0xdb   : > { %s3188_s9 = scalar_lea.sflag [#allocation6], %s376_s2  ;;  %p2714_p4 = scmp.ne.s32.totalorder %s3149_s26, %s2713_s24 }
  0xdc   : > { %s2718_s23 = scalar_lea.hbm %s3512_s1, 4096  ;;  %p2719_p5 = scmp.lt.u32.totalorder %s3149_s26, %s3512_s1 }
  0xdd   : > { %p2716_p10 = pnand %p2714_p4, %p2685_p8  ;;  %p2720_p7 = scmp.lt.u32.totalorder %s2718_s23, %s2713_s24 }
  0xde   : > { %p2722_p12 = scmp.lt.u32.totalorder %s2713_s24, %s3149_s26 }
  0xdf   : > { %p2717_p3 = pneg %p2716_p10  ;;  %p2721_p9 = por %p2720_p7, %p2719_p5 }
  0xe1   : > { %p2723_p1 = por %p2722_p12, %p2721_p9 }
  0xe3   : > { %p2724_p13 = pnand %p2723_p1, %p2717_p3 }
  0xe5   : > { %2727 = shalt.err (!%p2724_p13)
}
  0xe6   : > { %s2728_s4 = scalar_lea.vmem %s3185_s3, 2048  ;;  %s2842_s25 = smov [#allocation5]  }
  0xe7   : > { %p2729_p0 = scmp.ne.s32.totalorder %s3185_s3, %s2728_s4  ;;  %s2733_s28 = sshll.u32 %s2842_s25, 4  ;;  %s2734_s28 = int_to_ptr.vmem [resolvable:$false] %s2733_s28 }
  0xe8   : > { %s2735_s0 = scalar_lea.vmem %s2734_s28, 4096  ;;  %p2736_p10 = scmp.lt.s32.totalorder %s3185_s3, %s2734_s28 }
  0xe9   : > { %p2731_p2 = pnand %p2729_p0, %p2685_p8  ;;  %p2737_p5 = scmp.lt.s32.totalorder %s2735_s0, %s2728_s4 }
  0xeb   : > { %p2732_p4 = pneg %p2731_p2  ;;  %p2738_p7 = por %p2737_p5, %p2736_p10 }
  0xed   : > { %p2739_p9 = pnand %p2738_p7, %p2732_p4 }
  0xef   : > { %2742 = shalt.err (!%p2739_p9)
}
  0xf0   : > { %2355 = dma.hbm_to_vmem [thread:$0]  (!%p3142_p11), %s3149_s26, 2048, %s3185_s3, %s3188_s9, %s3556_s21, %s3556_s21, %s3555_s19  }
  0xf1   : > { %p3557_p8 = scmp.ne.s32.totalorder %s3539_s16, 0 }
  0xf2   : > { %s3220_s2 = sand.u32 (!%p3557_p8), 1, %s2821_s10  }
  0xf3   : > { %399 = sbr.rel (%p3557_p8) target bundleno = 1713 (0x6b1), region = 56  ;;  %s1970_s24 = sshll.u32 (!%p3557_p8), %s3220_s2, 7 }
  0xf4   : > { %s402_s17 = scalar_lea.sflag (!%p3557_p8), [#allocation3], %s3220_s2  ;;  %s3224_s5 = scalar_lea.vmem (!%p3557_p8), [#allocation2], %s1970_s24 }
  0xfa   : > { %2788 = dma.done.wait (%p3117_p6), %s402_s17, 2048  }
  0xfb   : > { %2790 = vsyncadd (%p3117_p6), %s402_s17, 4294965248  ;;  %s410_s3 = sand.u32 1, %s2918_s15   ;;  %s3231_s13 = scalar_lea.vmem [#allocation5], %s1970_s24 }
  0xfc   : > { %s411_s16 = scalar_lea.sflag [#allocation6], %s410_s3 }
  0xfd   : > { %2792 = dma.done.wait (%p3117_p6), %s411_s16, 2048  }
  0xfe   : > { %2794 = vsyncadd (%p3117_p6), %s411_s16, 4294965248  ;;  %p3558_p11 = scmp.eq.s32.totalorder %s2918_s15, 0 }
 0x100   : > { %2796 = dma.done.wait (%p3558_p11), [#allocation6], 1024   ;;  %p3559_p3 = pmov %p3558_p11 }
 0x102   : > { %2798 = vsyncadd (%p3559_p3), [#allocation6], 4294966272  ;;  %p3560_p12 = pmov %p3559_p3 }
 0x103   : > { %p3561_p1 = pmov %p3559_p3 }
 0x104   : > { %2800 = dma.done.wait (%p3560_p12), [#allocation9], 3072  }
 0x105   : > { %2802 = vsyncadd (%p3561_p1), [#allocation9], 4294964224  ;;  %p3562_p13 = pmov %p3561_p1 }
 0x106   : > { %p3563_p0 = pmov %p3561_p1 }
 0x107   : > { %2804 = dma.done.wait (%p3562_p13), [#allocation12], 2048  }
 0x108   : > { %2806 = vsyncadd (%p3563_p0), [#allocation12], 4294965248  ;;  %p3564_p6 = pmov %p3563_p0 }
 0x109   : > { %p3565_p2 = pmov %p3563_p0 }
 0x10a   : > { %2808 = dma.done.wait (%p3564_p6), [#allocation15], 1024  }
 0x10b   : > { %2810 = vsyncadd (%p3565_p2), [#allocation15], 4294966272  ;;  %v2419_v0 = vld [vmem:[#allocation7] sm:$0xff]   ;;  %v2420_v1 = vld [vmem:[#allocation7 + $0x8] sm:$0xff]   ;;  %s2298_s14 = smul.u32 384, %s3220_s2  ;;  %s3566_s26 = sld [smem:[#allocation29_spill]] }
 0x10c   : > { %2122 = vmatprep.subr.bf16.mxu0 %v2419_v0  ;;  %v2421_v2 = vld [vmem:[#allocation7 + $0x10] sm:$0xff]   ;;  %v2422_v3 = vld [vmem:[#allocation7 + $0x18] sm:$0xff]   ;;  %v489_v4 = vld [vmem:[%s3224_s5] sm:$0xff]  ;;  %s2299_s3 = smul.u32 6144, %s2918_s15  ;;  %s1787_s15 = scalar_lea.sflag [#allocation4], %s3220_s2 }
 0x10d   : > { %2123 = vmatpush3.bf16.msra.mxu0 %v2419_v0  ;;  %v490_v5 = vld [vmem:[%s3224_s5 + $0x8] sm:$0xff]  ;;  %v2423_v7 = vld [vmem:[#allocation7 + $0x20] sm:$0xff]   ;;  %v2429_v11 = vld [vmem:[#allocation8 + $0x10] sm:$0xff]   ;;  %s3296_s4 = scalar_lea.vmem [#allocation16], %s2298_s14  ;;  %p3567_p10 = scmp.ne.s32.totalorder %s3551_s20, 0 }
 0x10e   : > { %2124 = vmatprep.subr.bf16.mxu0 %v2420_v1  ;;  %v505_v6 = vpack.c.bf16 %v490_v5, %v489_v4  ;;  %v2427_v8 = vld [vmem:[#allocation8] sm:$0xff]   ;;  %v2428_v9 = vld [vmem:[#allocation8 + $0x8] sm:$0xff]   ;;  %v2425_v12 = vld [vmem:[#allocation7 + $0x30] sm:$0xff]   ;;  %s1801_s16 = sshll.u32 %s3296_s4, 4  ;;  %s2844_s9 = smov [#allocation16]   ;;  %s3464_s16 = int_to_ptr.vmem [resolvable:$true] %s1801_s16 }
 0x10f   : > { %v2424_v10 = vld [vmem:[#allocation7 + $0x28] sm:$0xff]   ;;  %2154 = vmatprep.subr.bf16.mxu1 %v2427_v8  ;;  %v2430_v13 = vld [vmem:[#allocation8 + $0x18] sm:$0xff]   ;;  %v2431_v15 = vld [vmem:[#allocation8 + $0x20] sm:$0xff]   ;;  %s2743_s21 = scalar_lea.vmem %s3464_s16, 6144  ;;  %s2747_s23 = sshll.u32 %s2844_s9, 4  ;;  %s2748_s23 = int_to_ptr.vmem [resolvable:$false] %s2747_s23 }
 0x110   : > { %2138 = vmatprep.mubr.bf16.mxu0 %v505_v6  ;;  %2155 = vmatpush3.bf16.msra.mxu1 %v2427_v8  ;;  %v2426_v14 = vld [vmem:[#allocation7 + $0x38] sm:$0xff]   ;;  %v491_v16 = vld [vmem:[%s3224_s5 + $0x10] sm:$0xff]  ;;  %v493_v18 = vld [vmem:[%s3224_s5 + $0x20] sm:$0xff]  ;;  %p2744_p4 = scmp.ne.s32.totalorder %s3464_s16, %s2743_s21  ;;  %s2749_s14 = scalar_lea.vmem %s2748_s23, 12288 }
 0x111   : > { %2125 = vmatpush3.bf16.msra.mxu0 %v2420_v1  ;;  %2156 = vmatprep.subr.bf16.mxu1 %v2428_v9  ;;  %v492_v17 = vld [vmem:[%s3224_s5 + $0x18] sm:$0xff]  ;;  %v494_v19 = vld [vmem:[%s3224_s5 + $0x28] sm:$0xff]  ;;  %v495_v23 = vld [vmem:[%s3224_s5 + $0x30] sm:$0xff]  ;;  %s3462_s19 = scalar_lea.hbm %s3566_s26, %s2299_s3  ;;  %p2750_p9 = scmp.lt.s32.totalorder %s3464_s16, %s2748_s23 }
 0x112   : > { %2126 = vmatprep.subr.bf16.mxu0 %v2421_v2  ;;  %v2432_v20 = vld [vmem:[#allocation8 + $0x28] sm:$0xff]   ;;  %v506_v21 = vpack.c.bf16 %v492_v17, %v491_v16  ;;  %v507_v22 = vpack.c.bf16 %v494_v19, %v493_v18  ;;  %v496_v24 = vld [vmem:[%s3224_s5 + $0x38] sm:$0xff]  ;;  %v497_v25 = vld [vmem:[%s3224_s5 + $0x40] sm:$0xff]  ;;  %p2745_p5 = pnand %p2744_p4, %p3567_p10  ;;  %p2751_p8 = scmp.lt.s32.totalorder %s2749_s14, %s2743_s21 }
 0x113   : > { %v498_v26 = vld [vmem:[%s3224_s5 + $0x48] sm:$0xff]  ;;  %v508_v27 = vpack.c.bf16 %v496_v24, %v495_v23  ;;  %v499_v29 = vld [vmem:[%s3224_s5 + $0x50] sm:$0xff]  ;;  %v500_v30 = vld [vmem:[%s3224_s5 + $0x58] sm:$0xff] }
 0x114   : > { %2157 = vmatpush3.bf16.msra.mxu1 %v2428_v9  ;;  %v509_v28 = vpack.c.bf16 %v498_v26, %v497_v25  ;;  %v501_v31 = vld [vmem:[%s3224_s5 + $0x60] sm:$0xff]  ;;  %v502_v32 = vld [vmem:[%s3224_s5 + $0x68] sm:$0xff]  ;;  %v510_v33 = vpack.c.bf16 %v500_v30, %v499_v29  ;;  %v503_v35 = vld [vmem:[%s3224_s5 + $0x70] sm:$0xff]  ;;  %p2746_p7 = pneg %p2745_p5  ;;  %p2752_p11 = por %p2751_p8, %p2750_p9 }
 0x115   : > { %2127 = vmatpush3.bf16.msra.mxu0 %v2421_v2  ;;  %2158 = vmatprep.subr.bf16.mxu1 %v2429_v11  ;;  %v511_v34 = vpack.c.bf16 %v502_v32, %v501_v31  ;;  %v504_v36 = vld [vmem:[%s3224_s5 + $0x78] sm:$0xff]  ;;  %v2433_v38 = vld [vmem:[#allocation8 + $0x30] sm:$0xff]   ;;  %v2435_v40 = vld [vmem:[#allocation10] ss:$8 sps:$4 sm:$0xff]  }
 0x116   : > { %2128 = vmatprep.subr.bf16.mxu0 %v2422_v3  ;;  %v512_v37 = vpack.c.bf16 %v504_v36, %v503_v35  ;;  %v2434_v39 = vld [vmem:[#allocation8 + $0x38] sm:$0xff]   ;;  %v2437_v41 = vld [vmem:[#allocation10 + $0x4] ss:$8 sps:$4 sm:$0xff]   ;;  %v2441_v45 = vld [vmem:[#allocation10 + $0x20] ss:$8 sps:$4 sm:$0xff]   ;;  %p2753_p3 = pnand %p2752_p11, %p2746_p7 }
 0x117   : > { %v2440_v42 = vld [vmem:[#allocation10 + $0x14] ss:$8 sps:$4 sm:$0xff]   ;;  %v2438_v43 = vld [vmem:[#allocation10 + $0x10] ss:$8 sps:$4 sm:$0xff]   ;;  %v2443_v44 = vld [vmem:[#allocation10 + $0x24] ss:$8 sps:$4 sm:$0xff]  }
 0x118   : > { %2159 = vmatpush3.bf16.msra.mxu1 %v2429_v11  ;;  %v2446_v46 = vld [vmem:[#allocation10 + $0x34] ss:$8 sps:$4 sm:$0xff]   ;;  %v2444_v47 = vld [vmem:[#allocation10 + $0x30] ss:$8 sps:$4 sm:$0xff]   ;;  %v2449_v48 = vld [vmem:[#allocation10 + $0x44] ss:$8 sps:$4 sm:$0xff]  }
 0x119   : > { %2129 = vmatpush3.bf16.msra.mxu0 %v2422_v3  ;;  %2160 = vmatprep.subr.bf16.mxu1 %v2430_v13  ;;  %v2447_v49 = vld [vmem:[#allocation10 + $0x40] ss:$8 sps:$4 sm:$0xff]   ;;  %v2452_v50 = vld [vmem:[#allocation10 + $0x54] ss:$8 sps:$4 sm:$0xff]   ;;  %v2450_v51 = vld [vmem:[#allocation10 + $0x50] ss:$8 sps:$4 sm:$0xff]  }
 0x11a   : > { %2130 = vmatprep.subr.bf16.mxu0 %v2423_v7  ;;  %v482_v52 = vld [vmem:[%s3519_s8] ss:$0 sm:$0xff] }
 0x11c   : > { %2161 = vmatpush3.bf16.msra.mxu1 %v2430_v13 }
 0x11d   : > { %2131 = vmatpush3.bf16.msra.mxu0 %v2423_v7  ;;  %2162 = vmatprep.subr.bf16.mxu1 %v2431_v15 }
 0x11e   : > { %2132 = vmatprep.subr.bf16.mxu0 %v2424_v10 }
 0x120   : > { %2163 = vmatpush3.bf16.msra.mxu1 %v2431_v15 }
 0x121   : > { %2133 = vmatpush3.bf16.msra.mxu0 %v2424_v10  ;;  %2164 = vmatprep.subr.bf16.mxu1 %v2432_v20 }
 0x122   : > { %2134 = vmatprep.subr.bf16.mxu0 %v2425_v12 }
 0x124   : > { %2165 = vmatpush3.bf16.msra.mxu1 %v2432_v20 }
 0x125   : > { %2135 = vmatpush3.bf16.msra.mxu0 %v2425_v12  ;;  %2166 = vmatprep.subr.bf16.mxu1 %v2433_v38 }
 0x126   : > { %2136 = vmatprep.subr.bf16.mxu0 %v2426_v14 }
 0x128   : > { %2167 = vmatpush3.bf16.msra.mxu1 %v2433_v38 }
 0x129   : > { %2137 = vmatpush3.bf16.msra.mxu0 %v2426_v14  ;;  %2168 = vmatprep.subr.bf16.mxu1 %v2434_v39 }
 0x12a   : > { %990 = vmatprep.subr.bf16.mxu0 %v2437_v41 }
 0x12c   : > { %2139 = vmatmul.mubr.bf16.vlgmr.msra.gmra.mrb[0].mxu0 %v506_v21  ;;  %2169 = vmatpush3.bf16.msra.mxu1 %v2434_v39 }
 0x12d   : > { %2142 = vmatprep.mubr.bf16.mxu0 %v507_v22  ;;  %991 = vmatpush1.bf16.msra.mxu0 %v2435_v40 }
 0x12e   : > { %992 = vmatprep.subr.bf16.mxu0 %v2440_v42 }
 0x131   : > { %993 = vmatpush1.bf16.msra.mxu0 %v2438_v43 }
 0x132   : > { %994 = vmatprep.subr.bf16.mxu0 %v2443_v44 }
 0x134   : > { %2143 = vmatmul.mubr.bf16.gmra.mrb[4].mxu0 %v508_v27 }
 0x135   : > { %2146 = vmatprep.mubr.bf16.mxu0 %v509_v28  ;;  %995 = vmatpush1.bf16.msra.mxu0 %v2441_v45  ;;  %v2455_v45 = vld [vmem:[#allocation10 + $0x64] ss:$8 sps:$4 sm:$0xff]  }
 0x136   : > { %996 = vmatprep.subr.bf16.mxu0 %v2446_v46  ;;  %v2453_v46 = vld [vmem:[#allocation10 + $0x60] ss:$8 sps:$4 sm:$0xff]  }
 0x139   : > { %997 = vmatpush1.bf16.msra.mxu0 %v2444_v47  ;;  %v2458_v47 = vld [vmem:[#allocation10 + $0x74] ss:$8 sps:$4 sm:$0xff]  }
 0x13a   : > { %998 = vmatprep.subr.bf16.mxu0 %v2449_v48  ;;  %v2456_v48 = vld [vmem:[#allocation10 + $0x70] ss:$8 sps:$4 sm:$0xff]  }
 0x13c   : > { %2147 = vmatmul.mubr.bf16.gmra.mrb[8].mxu0 %v510_v33 }
 0x13d   : > { %2150 = vmatprep.mubr.bf16.mxu0 %v511_v34  ;;  %999 = vmatpush1.bf16.msra.mxu0 %v2447_v49  ;;  %v2843_v49 = vmov 0  }
 0x13e   : > { %1000 = vmatprep.subr.bf16.mxu0 %v2452_v50  ;;  %v483_v50 = vld [vmem:[%s3519_s8 + $0x1] ss:$0 sm:$0xff] }
 0x141   : > { %1001 = vmatpush1.bf16.msra.mxu0 %v2450_v51 }
 0x142   : > { %1002 = vmatprep.subr.bf16.mxu0 %v2455_v45  ;;  %v2461_v45 = vld [vmem:[#allocation11 + $0x10] sm:$0xff]  }
 0x144   : > { %2151 = vmatmul.mubr.bf16.gmra.mrb[12].mxu0 %v512_v37 }
 0x145   : > { %1003 = vmatpush1.bf16.msra.mxu0 %v2453_v46  ;;  %1022 = vmatprep.mubr.bf16.mxu0 %v2843_v49  ;;  %v2462_v46 = vld [vmem:[#allocation11 + $0x18] sm:$0xff]  }
 0x146   : > { %1004 = vmatprep.subr.bf16.mxu0 %v2458_v47  ;;  %v2463_v47 = vld [vmem:[#allocation11 + $0x20] sm:$0xff]  }
 0x149   : > { %1005 = vmatpush1.bf16.msra.mxu0 %v2456_v48  ;;  %v2464_v48 = vld [vmem:[#allocation11 + $0x28] sm:$0xff]  }
 0x1ff   : > { %v2140_v53 = vpop.f32.mrb[0].mxu0 }
 0x200   : > { %v620_v54 = vadd.f32 %v2140_v53, %v482_v52  ;;  %v611_v55 = vpop.f32.mrb[1].mxu0 }
 0x201   : > { %v612_v56 = vadd.f32 %v611_v55, %v482_v52  ;;  %v2141_v57 = vpop.f32.mrb[2].mxu0 }
 0x202   : > { %v623_v58 = vadd.f32 %v2141_v57, %v482_v52  ;;  %v614_v59 = vpop.f32.mrb[3].mxu0  ;;  %v676_v61 = vmax.f32 %v620_v54, 0.0 }
 0x203   : > { %v615_v60 = vadd.f32 %v614_v59, %v482_v52  ;;  %v674_v63 = vmax.f32 %v612_v56, 0.0 }
 0x204   : > { %v677_v62 = vmax.f32 %v623_v58, 0.0 }
 0x205   : > { %v675_v0 = vmax.f32 %v615_v60, 0.0 }
 0x206   : > { %v691_v1 = vpack.c.bf16 %v677_v62, %v676_v61 }
 0x207   : > { %v2144_v2 = vpop.f32.mrb[4].mxu0  ;;  %v690_v3 = vpack.c.bf16 %v675_v0, %v674_v63 }
 0x208   : > { %v636_v4 = vadd.f32 %v2144_v2, %v482_v52  ;;  %v627_v5 = vpop.f32.mrb[5].mxu0 }
 0x209   : > { %v628_v6 = vadd.f32 %v627_v5, %v482_v52  ;;  %2170 = vmatprep.mubr.bf16.mxu1 %v690_v3  ;;  %v2145_v7 = vpop.f32.mrb[6].mxu0 }
 0x20a   : > { %v680_v8 = vmax.f32 %v636_v4, 0.0  ;;  %v639_v9 = vadd.f32 %v2145_v7, %v482_v52  ;;  %2171 = vmatmul.mubr.bf16.vlgmr.msra.gmra.mrb[0].mxu1 %v691_v1  ;;  %v630_v10 = vpop.f32.mrb[7].mxu0 }
 0x20b   : > { %v678_v11 = vmax.f32 %v628_v6, 0.0  ;;  %v631_v12 = vadd.f32 %v630_v10, %v482_v52 }
 0x20c   : > { %v681_v13 = vmax.f32 %v639_v9, 0.0 }
 0x20d   : > { %v679_v14 = vmax.f32 %v631_v12, 0.0 }
 0x20e   : > { %v693_v15 = vpack.c.bf16 %v681_v13, %v680_v8 }
 0x20f   : > { %v692_v16 = vpack.c.bf16 %v679_v14, %v678_v11  ;;  %v2148_v17 = vpop.f32.mrb[8].mxu0 }
 0x210   : > { %v652_v18 = vadd.f32 %v2148_v17, %v482_v52  ;;  %v643_v19 = vpop.f32.mrb[9].mxu0 }
 0x211   : > { %2174 = vmatprep.mubr.bf16.mxu1 %v692_v16  ;;  %v644_v20 = vadd.f32 %v643_v19, %v482_v52  ;;  %v2149_v21 = vpop.f32.mrb[10].mxu0 }
 0x212   : > { %2175 = vmatmul.mubr.bf16.gmra.mrb[4].mxu1 %v693_v15  ;;  %v684_v22 = vmax.f32 %v652_v18, 0.0  ;;  %v655_v23 = vadd.f32 %v2149_v21, %v482_v52  ;;  %v646_v24 = vpop.f32.mrb[11].mxu0 }
 0x213   : > { %v682_v25 = vmax.f32 %v644_v20, 0.0  ;;  %v647_v26 = vadd.f32 %v646_v24, %v482_v52 }
 0x214   : > { %v685_v27 = vmax.f32 %v655_v23, 0.0 }
 0x215   : > { %v683_v28 = vmax.f32 %v647_v26, 0.0 }
 0x216   : > { %v695_v29 = vpack.c.bf16 %v685_v27, %v684_v22 }
 0x217   : > { %v694_v30 = vpack.c.bf16 %v683_v28, %v682_v25  ;;  %v2152_v31 = vpop.f32.mrb[12].mxu0 }
 0x218   : > { %v668_v32 = vadd.f32 %v2152_v31, %v482_v52  ;;  %v659_v33 = vpop.f32.mrb[13].mxu0 }
 0x219   : > { %2178 = vmatprep.mubr.bf16.mxu1 %v694_v30  ;;  %v660_v34 = vadd.f32 %v659_v33, %v482_v52  ;;  %v2153_v35 = vpop.f32.mrb[14].mxu0 }
 0x21a   : > { %2179 = vmatmul.mubr.bf16.gmra.mrb[8].mxu1 %v695_v29  ;;  %v688_v36 = vmax.f32 %v668_v32, 0.0  ;;  %v671_v37 = vadd.f32 %v2153_v35, %v482_v52  ;;  %v662_v38 = vpop.f32.mrb[15].mxu0 }
 0x21b   : > { %v686_v39 = vmax.f32 %v660_v34, 0.0  ;;  %v663_v40 = vadd.f32 %v662_v38, %v482_v52 }
 0x21c   : > { %v689_v41 = vmax.f32 %v671_v37, 0.0 }
 0x21d   : > { %v687_v42 = vmax.f32 %v663_v40, 0.0 }
 0x21e   : > { %v697_v43 = vpack.c.bf16 %v689_v41, %v688_v36 }
 0x21f   : > { %v696_v44 = vpack.c.bf16 %v687_v42, %v686_v39 }
 0x221   : > { %2182 = vmatprep.mubr.bf16.mxu1 %v696_v44  ;;  %v2460_v44 = vld [vmem:[#allocation11 + $0x8] sm:$0xff]  }
 0x222   : > { %2183 = vmatmul.mubr.bf16.gmra.mrb[12].mxu1 %v697_v43  ;;  %v2459_v43 = vld [vmem:[#allocation11] sm:$0xff]  }
 0x223   : > { %2186 = vmatprep.subr.bf16.mxu1 %v2459_v43 }
 0x224   : > { %2187 = vmatpush3.bf16.msra.mxu1 %v2459_v43 }
 0x225   : > { %2188 = vmatprep.subr.bf16.mxu1 %v2460_v44 }
 0x228   : > { %2189 = vmatpush3.bf16.msra.mxu1 %v2460_v44 }
 0x229   : > { %2190 = vmatprep.subr.bf16.mxu1 %v2461_v45 }
 0x22c   : > { %2191 = vmatpush3.bf16.msra.mxu1 %v2461_v45  ;;  %v1106_v45 = vld [vmem:[%s3231_s13 + $0x18] sm:$0xff] }
 0x22d   : > { %2192 = vmatprep.subr.bf16.mxu1 %v2462_v46 }
 0x230   : > { %2193 = vmatpush3.bf16.msra.mxu1 %v2462_v46 }
 0x231   : > { %2194 = vmatprep.subr.bf16.mxu1 %v2463_v47 }
 0x234   : > { %2195 = vmatpush3.bf16.msra.mxu1 %v2463_v47 }
 0x235   : > { %2196 = vmatprep.subr.bf16.mxu1 %v2464_v48 }
 0x238   : > { %2197 = vmatpush3.bf16.msra.mxu1 %v2464_v48 }
 0x2dd   : > { %v2172_v51 = vpop.f32.mrb[0].mxu1 }
 0x2de   : > { %v805_v52 = vadd.f32 %v2172_v51, %v483_v50  ;;  %v796_v53 = vpop.f32.mrb[1].mxu1  ;;  %v3283_v51 = vld [vmem:[#allocation13] sm:$0xff]  }
 0x2df   : > { %v797_v54 = vadd.f32 %v796_v53, %v483_v50  ;;  %v2173_v55 = vpop.f32.mrb[2].mxu1 }
 0x2e0   : > { %v808_v56 = vadd.f32 %v2173_v55, %v483_v50  ;;  %v799_v57 = vpop.f32.mrb[3].mxu1  ;;  %v861_v59 = vmax.f32 %v805_v52, 0.0  ;;  %v900_v52 = vlaneseq  ;;  %v1978_v55 = vld [vmem:[%s3519_s8 + $0x2] ss:$8 sm:$0x3] }
 0x2e1   : > { %v800_v58 = vadd.f32 %v799_v57, %v483_v50  ;;  %v859_v61 = vmax.f32 %v797_v54, 0.0 }
 0x2e2   : > { %v862_v60 = vmax.f32 %v808_v56, 0.0  ;;  %v901_v53 = vshrl.u32 %v900_v52, 7 }
 0x2e3   : > { %v860_v62 = vmax.f32 %v800_v58, 0.0 }
 0x2e4   : > { %v876_v63 = vpack.c.bf16 %v862_v60, %v861_v59  ;;  %v902_v54 = vsub.s32 0, %v901_v53  ;;  %v906_v56 = vsub.s32 1, %v901_v53 }
 0x2e5   : > { %v875_v0 = vpack.c.bf16 %v860_v62, %v859_v61  ;;  %v2176_v1 = vpop.f32.mrb[4].mxu1 }
 0x2e6   : > { %v821_v2 = vadd.f32 %v2176_v1, %v483_v50  ;;  %v812_v3 = vpop.f32.mrb[5].mxu1  ;;  %v3290_v57 = vrot.slane %v1978_v55, %v902_v54  ;;  %v3292_v58 = vrot.slane %v1978_v55, %v906_v56 }
 0x2e7   : > { %v813_v4 = vadd.f32 %v812_v3, %v483_v50  ;;  %1023 = vmatmul.mubr.bf16.vlgmr.msra.gmra.mrb[16].mxu0 %v875_v0  ;;  %v2177_v5 = vpop.f32.mrb[6].mxu1 }
 0x2e8   : > { %v865_v6 = vmax.f32 %v821_v2, 0.0  ;;  %v824_v7 = vadd.f32 %v2177_v5, %v483_v50  ;;  %v815_v8 = vpop.f32.mrb[7].mxu1  ;;  %1032 = vmatprep.mubr.bf16.mxu0 %v2843_v49 }
 0x2e9   : > { %v863_v9 = vmax.f32 %v813_v4, 0.0  ;;  %v816_v10 = vadd.f32 %v815_v8, %v483_v50 }
 0x2ea   : > { %v866_v11 = vmax.f32 %v824_v7, 0.0 }
 0x2eb   : > { %v864_v12 = vmax.f32 %v816_v10, 0.0 }
 0x2ec   : > { %v878_v13 = vpack.c.bf16 %v866_v11, %v865_v6 }
 0x2ed   : > { %v877_v14 = vpack.c.bf16 %v864_v12, %v863_v9  ;;  %v2180_v15 = vpop.f32.mrb[8].mxu1 }
 0x2ee   : > { %v837_v16 = vadd.f32 %v2180_v15, %v483_v50  ;;  %v828_v17 = vpop.f32.mrb[9].mxu1 }
 0x2ef   : > { %1033 = vmatmul.mubr.bf16.gmra.mrb[20].mxu0 %v876_v63  ;;  %v829_v18 = vadd.f32 %v828_v17, %v483_v50  ;;  %v2181_v19 = vpop.f32.mrb[10].mxu1 }
 0x2f0   : > { %v869_v20 = vmax.f32 %v837_v16, 0.0  ;;  %1042 = vmatprep.mubr.bf16.mxu0 %v2843_v49  ;;  %v840_v21 = vadd.f32 %v2181_v19, %v483_v50  ;;  %v831_v22 = vpop.f32.mrb[11].mxu1 }
 0x2f1   : > { %v867_v23 = vmax.f32 %v829_v18, 0.0  ;;  %v832_v24 = vadd.f32 %v831_v22, %v483_v50 }
 0x2f2   : > { %v870_v25 = vmax.f32 %v840_v21, 0.0 }
 0x2f3   : > { %v868_v26 = vmax.f32 %v832_v24, 0.0 }
 0x2f4   : > { %v880_v27 = vpack.c.bf16 %v870_v25, %v869_v20  ;;  %v1103_v20 = vld [vmem:[%s3231_s13] sm:$0xff] }
 0x2f5   : > { %v879_v28 = vpack.c.bf16 %v868_v26, %v867_v23  ;;  %v2184_v29 = vpop.f32.mrb[12].mxu1  ;;  %v1104_v26 = vld [vmem:[%s3231_s13 + $0x8] sm:$0xff] }
 0x2f6   : > { %v853_v30 = vadd.f32 %v2184_v29, %v483_v50  ;;  %v844_v31 = vpop.f32.mrb[13].mxu1 }
 0x2f7   : > { %1043 = vmatmul.mubr.bf16.gmra.mrb[24].mxu0 %v877_v14  ;;  %v845_v32 = vadd.f32 %v844_v31, %v483_v50  ;;  %v2185_v33 = vpop.f32.mrb[14].mxu1 }
 0x2f8   : > { %1052 = vmatprep.mubr.bf16.mxu0 %v2843_v49  ;;  %v873_v34 = vmax.f32 %v853_v30, 0.0  ;;  %v856_v35 = vadd.f32 %v2185_v33, %v483_v50  ;;  %v847_v36 = vpop.f32.mrb[15].mxu1 }
 0x2f9   : > { %v871_v37 = vmax.f32 %v845_v32, 0.0  ;;  %v848_v38 = vadd.f32 %v847_v36, %v483_v50  ;;  %v2466_v50 = vld [vmem:[#allocation11 + $0x38] sm:$0xff]  }
 0x2fa   : > { %v874_v39 = vmax.f32 %v856_v35, 0.0 }
 0x2fb   : > { %v872_v40 = vmax.f32 %v848_v38, 0.0  ;;  %v1105_v38 = vld [vmem:[%s3231_s13 + $0x10] sm:$0xff] }
 0x2fc   : > { %v882_v41 = vpack.c.bf16 %v874_v39, %v873_v34 }
 0x2fd   : > { %v881_v42 = vpack.c.bf16 %v872_v40, %v871_v37 }
 0x2ff   : > { %1053 = vmatmul.mubr.bf16.gmra.mrb[28].mxu0 %v878_v13 }
 0x300   : > { %1062 = vmatprep.mubr.bf16.mxu0 %v2843_v49 }
 0x307   : > { %1063 = vmatmul.mubr.bf16.gmra.mrb[32].mxu0 %v879_v28 }
 0x308   : > { %1072 = vmatprep.mubr.bf16.mxu0 %v2843_v49 }
 0x30f   : > { %1073 = vmatmul.mubr.bf16.gmra.mrb[36].mxu0 %v880_v27 }
 0x310   : > { %1082 = vmatprep.mubr.bf16.mxu0 %v2843_v49 }
 0x317   : > { %1083 = vmatmul.mubr.bf16.gmra.mrb[40].mxu0 %v881_v42 }
 0x318   : > { %1092 = vmatprep.mubr.bf16.mxu0 %v2843_v49  ;;  %v2465_v49 = vld [vmem:[#allocation11 + $0x30] sm:$0xff]  }
 0x319   : > { %2198 = vmatprep.subr.bf16.mxu1 %v2465_v49 }
 0x31a   : > { %2199 = vmatpush3.bf16.msra.mxu1 %v2465_v49 }
 0x31b   : > { %2200 = vmatprep.subr.bf16.mxu1 %v2466_v50 }
 0x31e   : > { %2201 = vmatpush3.bf16.msra.mxu1 %v2466_v50 }
 0x31f   : > { %1093 = vmatmul.mubr.bf16.gmra.mrb[44].mxu0 %v882_v41  ;;  %2218 = vmatprep.subr.bf16.mxu1 %v3283_v51 }
 0x3ba   : > { %v1024_v59 = vpop.f32.mrb[16].mxu0 }
 0x3bb   : > { %v1025_v60 = vadd.f32 %v1024_v59, %v3290_v57  ;;  %v1026_v61 = vpop.f32.mrb[17].mxu0 }
 0x3bc   : > { %v1027_v62 = vadd.f32 %v1026_v61, %v3292_v58  ;;  %v1028_v63 = vpop.f32.mrb[18].mxu0 }
 0x3bd   : > { %1754 = vst [vmem:[%s3296_s4 + $0x8] sm:$0xff] %v1025_v60  ;;  %v1029_v0 = vadd.f32 %v1028_v63, %v3290_v57  ;;  %v1030_v1 = vpop.f32.mrb[19].mxu0 }
 0x3be   : > { %v1119_v2 = vmul.f32 0.5, %v1027_v62  ;;  %1755 = vst [vmem:[%s3296_s4 + $0x10] sm:$0xff] %v1027_v62  ;;  %v1031_v3 = vadd.f32 %v1030_v1, %v3292_v58 }
 0x3bf   : > { %1756 = vst [vmem:[%s3296_s4 + $0x20] sm:$0xff] %v1029_v0 }
 0x3c0   : > { %v1135_v4 = vmul.f32 1.442695, %v1119_v2  ;;  %v1120_v5 = vmul.f32 0.5, %v1031_v3  ;;  %1757 = vst [vmem:[%s3296_s4 + $0x28] sm:$0xff] %v1031_v3 }
 0x3c2   : > { %2483 = vpow2.f32 %v1135_v4  ;;  %v1137_v6 = vmul.f32 1.442695, %v1120_v5  ;;  %v1034_v7 = vpop.f32.mrb[20].mxu0  ;;  %v2468_v4 = vld [vmem:[#allocation13 + $0x8] sm:$0xff]  }
 0x3c3   : > { %v3305_v8 = vadd.f32 %v1034_v7, %v3290_v57  ;;  %v1036_v9 = vpop.f32.mrb[21].mxu0 }
 0x3c4   : > { %2485 = vpow2.f32 %v1137_v6  ;;  %v1037_v10 = vadd.f32 %v1036_v9, %v3292_v58  ;;  %v1038_v11 = vpop.f32.mrb[22].mxu0 }
 0x3c5   : > { %1758 = vst [vmem:[%s3296_s4 + $0x38] sm:$0xff] %v3305_v8  ;;  %v1039_v12 = vadd.f32 %v1038_v11, %v3290_v57  ;;  %v1040_v13 = vpop.f32.mrb[23].mxu0 }
 0x3c6   : > { %v1121_v14 = vmul.f32 0.5, %v1037_v10  ;;  %1759 = vst [vmem:[%s3296_s4 + $0x40] sm:$0xff] %v1037_v10  ;;  %v1041_v15 = vadd.f32 %v1040_v13, %v3292_v58 }
 0x3c7   : > { %1760 = vst [vmem:[%s3296_s4 + $0x50] sm:$0xff] %v1039_v12 }
 0x3c8   : > { %v1139_v16 = vmul.f32 1.442695, %v1121_v14  ;;  %v1122_v17 = vmul.f32 0.5, %v1041_v15  ;;  %1761 = vst [vmem:[%s3296_s4 + $0x58] sm:$0xff] %v1041_v15 }
 0x3ca   : > { %2487 = vpow2.f32 %v1139_v16  ;;  %v1141_v18 = vmul.f32 1.442695, %v1122_v17  ;;  %v1044_v19 = vpop.f32.mrb[24].mxu0  ;;  %v2469_v17 = vld [vmem:[#allocation13 + $0x10] sm:$0xff]  }
 0x3cb   : > { %v3317_v21 = vadd.f32 %v1044_v19, %v3290_v57  ;;  %v1046_v22 = vpop.f32.mrb[25].mxu0 }
 0x3cc   : > { %v2484_v23 = vpop.eup %2483  ;;  %2489 = vpow2.f32 %v1141_v18  ;;  %v1047_v24 = vadd.f32 %v1046_v22, %v3292_v58  ;;  %v1048_v25 = vpop.f32.mrb[26].mxu0 }
 0x3cd   : > { %1762 = vst [vmem:[%s3296_s4 + $0x68] sm:$0xff] %v3317_v21  ;;  %v3324_v27 = vadd.f32 %v1048_v25, %v3290_v57  ;;  %v1050_v28 = vpop.f32.mrb[27].mxu0  ;;  %v1167_v29 = vmul.f32 %v2484_v23, %v1103_v20 }
 0x3ce   : > { %v2486_v30 = vpop.eup %2485  ;;  %v1123_v31 = vmul.f32 0.5, %v1047_v24  ;;  %1763 = vst [vmem:[%s3296_s4 + $0x70] sm:$0xff] %v1047_v24  ;;  %v1051_v32 = vadd.f32 %v1050_v28, %v3292_v58  ;;  %v1109_v24 = vld [vmem:[%s3231_s13 + $0x30] sm:$0xff] }
 0x3cf   : > { %1764 = vst [vmem:[%s3296_s4 + $0x80] sm:$0xff] %v3324_v27  ;;  %v1168_v33 = vmul.f32 %v2486_v30, %v1104_v26  ;;  %v1183_v34 = vadd.f32 %v1167_v29, %v1025_v60  ;;  %v2470_v26 = vld [vmem:[#allocation13 + $0x18] sm:$0xff]  }
 0x3d0   : > { %v1143_v35 = vmul.f32 1.442695, %v1123_v31  ;;  %v1124_v36 = vmul.f32 0.5, %v1051_v32  ;;  %1765 = vst [vmem:[%s3296_s4 + $0x88] sm:$0xff] %v1051_v32  ;;  %v1110_v30 = vld [vmem:[%s3231_s13 + $0x38] sm:$0xff] }
 0x3d1   : > { %v1184_v37 = vadd.f32 %v1168_v33, %v1029_v0  ;;  %v1107_v0 = vld [vmem:[%s3231_s13 + $0x20] sm:$0xff] }
 0x3d2   : > { %2491 = vpow2.f32 %v1143_v35  ;;  %v1145_v39 = vmul.f32 1.442695, %v1124_v36  ;;  %v1054_v40 = vpop.f32.mrb[28].mxu0 }
 0x3d3   : > { %v3333_v41 = vadd.f32 %v1054_v40, %v3290_v57  ;;  %v1056_v42 = vpop.f32.mrb[29].mxu0  ;;  %v1199_v43 = vpack.c.bf16 %v1184_v37, %v1183_v34 }
 0x3d4   : > { %v2488_v44 = vpop.eup %2487  ;;  %2493 = vpow2.f32 %v1145_v39  ;;  %v1057_v46 = vadd.f32 %v1056_v42, %v3292_v58  ;;  %v1058_v47 = vpop.f32.mrb[30].mxu0  ;;  %v2471_v39 = vld [vmem:[#allocation13 + $0x20] sm:$0xff]  }
 0x3d5   : > { %v1169_v48 = vmul.f32 %v2488_v44, %v1105_v38  ;;  %1766 = vst [vmem:[%s3296_s4 + $0x98] sm:$0xff] %v3333_v41  ;;  %v3340_v49 = vadd.f32 %v1058_v47, %v3290_v57  ;;  %v1060_v50 = vpop.f32.mrb[31].mxu0  ;;  %2202 = vmatprep.mubr.bf16.mxu1 %v1199_v43 }
 0x3d6   : > { %v2490_v52 = vpop.eup %2489  ;;  %v1125_v53 = vmul.f32 0.5, %v1057_v46  ;;  %1767 = vst [vmem:[%s3296_s4 + $0xa0] sm:$0xff] %v1057_v46  ;;  %v1061_v54 = vadd.f32 %v1060_v50, %v3292_v58  ;;  %v1111_v46 = vld [vmem:[%s3231_s13 + $0x40] sm:$0xff]  ;;  %v2472_v50 = vld [vmem:[#allocation13 + $0x28] sm:$0xff]  }
 0x3d7   : > { %v1170_v55 = vmul.f32 %v2490_v52, %v1106_v45  ;;  %1768 = vst [vmem:[%s3296_s4 + $0xb0] sm:$0xff] %v3340_v49  ;;  %v1185_v56 = vadd.f32 %v1169_v48, %v3305_v8  ;;  %v1108_v8 = vld [vmem:[%s3231_s13 + $0x28] sm:$0xff] }
 0x3d8   : > { %v1147_v59 = vmul.f32 1.442695, %v1125_v53  ;;  %v1126_v60 = vmul.f32 0.5, %v1061_v54  ;;  %1769 = vst [vmem:[%s3296_s4 + $0xb8] sm:$0xff] %v1061_v54  ;;  %v1112_v54 = vld [vmem:[%s3231_s13 + $0x48] sm:$0xff] }
 0x3d9   : > { %v1186_v61 = vadd.f32 %v1170_v55, %v1039_v12 }
 0x3da   : > { %2495 = vpow2.f32 %v1147_v59  ;;  %v1149_v62 = vmul.f32 1.442695, %v1126_v60  ;;  %v1064_v63 = vpop.f32.mrb[32].mxu0 }
 0x3db   : > { %v3350_v1 = vadd.f32 %v1064_v63, %v3290_v57  ;;  %v1066_v2 = vpop.f32.mrb[33].mxu0  ;;  %v1200_v3 = vpack.c.bf16 %v1186_v61, %v1185_v56 }
 0x3dc   : > { %v2492_v5 = vpop.eup %2491  ;;  %2497 = vpow2.f32 %v1149_v62  ;;  %v1067_v6 = vadd.f32 %v1066_v2, %v3292_v58  ;;  %v1068_v7 = vpop.f32.mrb[34].mxu0 }
 0x3dd   : > { %1770 = vst [vmem:[%s3296_s4 + $0xc8] sm:$0xff] %v3350_v1  ;;  %v3357_v9 = vadd.f32 %v1068_v7, %v3290_v57  ;;  %v1070_v10 = vpop.f32.mrb[35].mxu0  ;;  %2203 = vmatmul.mubr.bf16.vlgmr.msra.gmra.mrb[16].mxu1 %v1200_v3  ;;  %v1171_v11 = vmul.f32 %v2492_v5, %v1107_v0  ;;  %v1113_v7 = vld [vmem:[%s3231_s13 + $0x50] sm:$0xff] }
 0x3de   : > { %v2494_v12 = vpop.eup %2493  ;;  %v1127_v13 = vmul.f32 0.5, %v1067_v6  ;;  %1771 = vst [vmem:[%s3296_s4 + $0xd0] sm:$0xff] %v1067_v6  ;;  %v1071_v14 = vadd.f32 %v1070_v10, %v3292_v58  ;;  %2219 = vmatpush3.bf16.msra.mxu1 %v3283_v51 }
 0x3df   : > { %1772 = vst [vmem:[%s3296_s4 + $0xe0] sm:$0xff] %v3357_v9  ;;  %v1172_v15 = vmul.f32 %v2494_v12, %v1108_v8  ;;  %v1187_v16 = vadd.f32 %v1171_v11, %v3317_v21  ;;  %2220 = vmatprep.subr.bf16.mxu1 %v2468_v4 }
 0x3e0   : > { %v1151_v18 = vmul.f32 1.442695, %v1127_v13  ;;  %v1128_v19 = vmul.f32 0.5, %v1071_v14  ;;  %1773 = vst [vmem:[%s3296_s4 + $0xe8] sm:$0xff] %v1071_v14  ;;  %v1114_v14 = vld [vmem:[%s3231_s13 + $0x58] sm:$0xff] }
 0x3e1   : > { %v1188_v20 = vadd.f32 %v1172_v15, %v3324_v27 }
 0x3e2   : > { %2499 = vpow2.f32 %v1151_v18  ;;  %v1153_v22 = vmul.f32 1.442695, %v1128_v19  ;;  %v1074_v23 = vpop.f32.mrb[36].mxu0  ;;  %2221 = vmatpush3.bf16.msra.mxu1 %v2468_v4 }
 0x3e3   : > { %v3369_v51 = vadd.f32 %v1074_v23, %v3290_v57  ;;  %v1076_v25 = vpop.f32.mrb[37].mxu0  ;;  %v1201_v21 = vpack.c.bf16 %v1188_v20, %v1187_v16  ;;  %2222 = vmatprep.subr.bf16.mxu1 %v2469_v17 }
 0x3e4   : > { %v2496_v28 = vpop.eup %2495  ;;  %2501 = vpow2.f32 %v1153_v22  ;;  %v1077_v29 = vadd.f32 %v1076_v25, %v3292_v58  ;;  %v1078_v27 = vpop.f32.mrb[38].mxu0 }
 0x3e5   : > { %1774 = vst [vmem:[%s3296_s4 + $0xf8] sm:$0xff] %v3369_v51  ;;  %v3376_v31 = vadd.f32 %v1078_v27, %v3290_v57  ;;  %v1080_v32 = vpop.f32.mrb[39].mxu0  ;;  %2206 = vmatprep.mubr.bf16.mxu1 %v1201_v21  ;;  %v1173_v33 = vmul.f32 %v2496_v28, %v1109_v24  ;;  %v1115_v21 = vld [vmem:[%s3231_s13 + $0x60] sm:$0xff] }
 0x3e6   : > { %v2498_v34 = vpop.eup %2497  ;;  %v1129_v35 = vmul.f32 0.5, %v1077_v29  ;;  %1775 = vst [vmem:[%s3296_s4 + $0x100] sm:$0xff] %v1077_v29  ;;  %v1081_v36 = vadd.f32 %v1080_v32, %v3292_v58  ;;  %2223 = vmatpush3.bf16.msra.mxu1 %v2469_v17  ;;  %v1116_v29 = vld [vmem:[%s3231_s13 + $0x68] sm:$0xff] }
 0x3e7   : > { %1776 = vst [vmem:[%s3296_s4 + $0x110] sm:$0xff] %v3376_v31  ;;  %v1174_v37 = vmul.f32 %v2498_v34, %v1110_v30  ;;  %v1189_v38 = vadd.f32 %v1173_v33, %v3333_v41  ;;  %2224 = vmatprep.subr.bf16.mxu1 %v2470_v26  ;;  %v1117_v33 = vld [vmem:[%s3231_s13 + $0x70] sm:$0xff] }
 0x3e8   : > { %v1155_v40 = vmul.f32 1.442695, %v1129_v35  ;;  %v1130_v42 = vmul.f32 0.5, %v1081_v36  ;;  %1777 = vst [vmem:[%s3296_s4 + $0x118] sm:$0xff] %v1081_v36  ;;  %v1118_v36 = vld [vmem:[%s3231_s13 + $0x78] sm:$0xff] }
 0x3e9   : > { %v1190_v43 = vadd.f32 %v1174_v37, %v3340_v49 }
 0x3ea   : > { %2503 = vpow2.f32 %v1155_v40  ;;  %v1157_v44 = vmul.f32 1.442695, %v1130_v42  ;;  %v1084_v45 = vpop.f32.mrb[40].mxu0  ;;  %2225 = vmatpush3.bf16.msra.mxu1 %v2470_v26 }
 0x3eb   : > { %v3387_v47 = vadd.f32 %v1084_v45, %v3290_v57  ;;  %v1086_v48 = vpop.f32.mrb[41].mxu0  ;;  %v1202_v41 = vpack.c.bf16 %v1190_v43, %v1189_v38  ;;  %2226 = vmatprep.subr.bf16.mxu1 %v2471_v39  ;;  %v2473_v43 = vld [vmem:[#allocation13 + $0x30] sm:$0xff]   ;;  %v2475_v45 = vld [vmem:[#allocation14] sm:$0xff]  }
 0x3ec   : > { %v2500_v52 = vpop.eup %2499  ;;  %2505 = vpow2.f32 %v1157_v44  ;;  %v1087_v53 = vadd.f32 %v1086_v48, %v3292_v58  ;;  %v1088_v49 = vpop.f32.mrb[42].mxu0  ;;  %v2474_v44 = vld [vmem:[#allocation13 + $0x38] sm:$0xff]   ;;  %2250 = vmatprep.subr.bf16.mxu0 %v2475_v45 }
 0x3ed   : > { %1778 = vst [vmem:[%s3296_s4 + $0x128] sm:$0xff] %v3387_v47  ;;  %v1089_v55 = vadd.f32 %v1088_v49, %v3290_v57  ;;  %v1090_v56 = vpop.f32.mrb[43].mxu0  ;;  %2207 = vmatmul.mubr.bf16.gmra.mrb[20].mxu1 %v1202_v41  ;;  %v1175_v59 = vmul.f32 %v2500_v52, %v1111_v46  ;;  %v2476_v46 = vld [vmem:[#allocation14 + $0x8] sm:$0xff]   ;;  %2251 = vmatpush3.bf16.msra.mxu0 %v2475_v45  ;;  %v2478_v48 = vld [vmem:[#allocation14 + $0x18] sm:$0xff]   ;;  %v2479_v41 = vld [vmem:[#allocation14 + $0x20] sm:$0xff]  }
 0x3ee   : > { %v2502_v60 = vpop.eup %2501  ;;  %v1131_v61 = vmul.f32 0.5, %v1087_v53  ;;  %1779 = vst [vmem:[%s3296_s4 + $0x130] sm:$0xff] %v1087_v53  ;;  %v1091_v62 = vadd.f32 %v1090_v56, %v3292_v58  ;;  %2227 = vmatpush3.bf16.msra.mxu1 %v2471_v39  ;;  %2252 = vmatprep.subr.bf16.mxu0 %v2476_v46  ;;  %v3420_v52 = vld [vmem:[%s3519_s8 + $0x3] ss:$0 sm:$0xff] }
 0x3ef   : > { %1780 = vst [vmem:[%s3296_s4 + $0x140] sm:$0xff] %v1089_v55  ;;  %v1176_v63 = vmul.f32 %v2502_v60, %v1112_v54  ;;  %v1191_v0 = vadd.f32 %v1175_v59, %v3350_v1  ;;  %2228 = vmatprep.subr.bf16.mxu1 %v2472_v50 }
 0x3f0   : > { %v1159_v2 = vmul.f32 1.442695, %v1131_v61  ;;  %v1132_v3 = vmul.f32 0.5, %v1091_v62  ;;  %1781 = vst [vmem:[%s3296_s4 + $0x148] sm:$0xff] %v1091_v62 }
 0x3f1   : > { %v1192_v4 = vadd.f32 %v1176_v63, %v3357_v9  ;;  %2253 = vmatpush3.bf16.msra.mxu0 %v2476_v46 }
 0x3f2   : > { %2507 = vpow2.f32 %v1159_v2  ;;  %v1161_v5 = vmul.f32 1.442695, %v1132_v3  ;;  %v1094_v6 = vpop.f32.mrb[44].mxu0  ;;  %2229 = vmatpush3.bf16.msra.mxu1 %v2472_v50  ;;  %v2480_v50 = vld [vmem:[#allocation14 + $0x28] sm:$0xff]  }
 0x3f3   : > { %v1095_v8 = vadd.f32 %v1094_v6, %v3290_v57  ;;  %v1096_v10 = vpop.f32.mrb[45].mxu0  ;;  %v1203_v11 = vpack.c.bf16 %v1192_v4, %v1191_v0  ;;  %2230 = vmatprep.subr.bf16.mxu1 %v2473_v43 }
 0x3f4   : > { %v2504_v1 = vpop.eup %2503  ;;  %2509 = vpow2.f32 %v1161_v5  ;;  %v1097_v12 = vadd.f32 %v1096_v10, %v3292_v58  ;;  %v1098_v13 = vpop.f32.mrb[46].mxu0 }
 0x3f5   : > { %1782 = vst [vmem:[%s3296_s4 + $0x158] sm:$0xff] %v1095_v8  ;;  %v1099_v9 = vadd.f32 %v1098_v13, %v3290_v57  ;;  %v1100_v15 = vpop.f32.mrb[47].mxu0  ;;  %2210 = vmatprep.mubr.bf16.mxu1 %v1203_v11  ;;  %v1177_v16 = vmul.f32 %v2504_v1, %v1113_v7 }
 0x3f6   : > { %v2506_v17 = vpop.eup %2505  ;;  %v1133_v18 = vmul.f32 0.5, %v1097_v12  ;;  %1783 = vst [vmem:[%s3296_s4 + $0x160] sm:$0xff] %v1097_v12  ;;  %v1101_v19 = vadd.f32 %v1100_v15, %v3292_v58  ;;  %2231 = vmatpush3.bf16.msra.mxu1 %v2473_v43 }
 0x3f7   : > { %1784 = vst [vmem:[%s3296_s4 + $0x170] sm:$0xff] %v1099_v9  ;;  %v1178_v20 = vmul.f32 %v2506_v17, %v1114_v14  ;;  %v1193_v22 = vadd.f32 %v1177_v16, %v3369_v51  ;;  %2232 = vmatprep.subr.bf16.mxu1 %v2474_v44 }
 0x3f8   : > { %v1163_v23 = vmul.f32 1.442695, %v1133_v18  ;;  %v1134_v24 = vmul.f32 0.5, %v1101_v19  ;;  %1785 = vst [vmem:[%s3296_s4 + $0x178] sm:$0xff] %v1101_v19 }
 0x3f9   : > { %v1194_v57 = vadd.f32 %v1178_v20, %v3376_v31 }
 0x3fa   : > { %2511 = vpow2.f32 %v1163_v23  ;;  %v1165_v25 = vmul.f32 1.442695, %v1134_v24  ;;  %2233 = vmatpush3.bf16.msra.mxu1 %v2474_v44  ;;  %v2481_v44 = vld [vmem:[#allocation14 + $0x30] sm:$0xff]  }
 0x3fb   : > { %v1204_v26 = vpack.c.bf16 %v1194_v57, %v1193_v22  ;;  %2282 = vmatprep.subr.bf16.mxu1 %v2475_v45 }
 0x3fc   : > { %v2508_v28 = vpop.eup %2507  ;;  %2513 = vpow2.f32 %v1165_v25 }
 0x3fd   : > { %2211 = vmatmul.mubr.bf16.gmra.mrb[24].mxu1 %v1204_v26  ;;  %v1179_v58 = vmul.f32 %v2508_v28, %v1115_v21 }
 0x3fe   : > { %v2510_v27 = vpop.eup %2509 }
 0x3ff   : > { %v1180_v30 = vmul.f32 %v2510_v27, %v1116_v29  ;;  %v1195_v51 = vadd.f32 %v1179_v58, %v3387_v47  ;;  %v2477_v47 = vld [vmem:[#allocation14 + $0x10] sm:$0xff]  }
 0x400   : > { %2254 = vmatprep.subr.bf16.mxu0 %v2477_v47 }
 0x401   : > { %v1196_v32 = vadd.f32 %v1180_v30, %v1089_v55  ;;  %2255 = vmatpush3.bf16.msra.mxu0 %v2477_v47 }
 0x402   : > { %2256 = vmatprep.subr.bf16.mxu0 %v2478_v48 }
 0x403   : > { %v1205_v34 = vpack.c.bf16 %v1196_v32, %v1195_v51 }
 0x404   : > { %v2512_v35 = vpop.eup %2511 }
 0x405   : > { %2214 = vmatprep.mubr.bf16.mxu1 %v1205_v34  ;;  %v1181_v31 = vmul.f32 %v2512_v35, %v1117_v33  ;;  %2257 = vmatpush3.bf16.msra.mxu0 %v2478_v48 }
 0x406   : > { %v2514_v37 = vpop.eup %2513  ;;  %2258 = vmatprep.subr.bf16.mxu0 %v2479_v41 }
 0x407   : > { %v1182_v38 = vmul.f32 %v2514_v37, %v1118_v36  ;;  %v1197_v39 = vadd.f32 %v1181_v31, %v1095_v8 }
 0x409   : > { %v1198_v40 = vadd.f32 %v1182_v38, %v1099_v9  ;;  %2259 = vmatpush3.bf16.msra.mxu0 %v2479_v41 }
 0x40a   : > { %2260 = vmatprep.subr.bf16.mxu0 %v2480_v50 }
 0x40b   : > { %v1206_v42 = vpack.c.bf16 %v1198_v40, %v1197_v39 }
 0x40d   : > { %2215 = vmatmul.mubr.bf16.gmra.mrb[28].mxu1 %v1206_v42  ;;  %2261 = vmatpush3.bf16.msra.mxu0 %v2480_v50 }
 0x40e   : > { %2262 = vmatprep.subr.bf16.mxu0 %v2481_v44 }
 0x411   : > { %2263 = vmatpush3.bf16.msra.mxu0 %v2481_v44 }
 0x4b0   : > { %v2204_v53 = vpop.f32.mrb[16].mxu1 }
 0x4b1   : > { %v1314_v49 = vadd.f32 %v2204_v53, %v3420_v52  ;;  %v1305_v54 = vpop.f32.mrb[17].mxu1 }
 0x4b2   : > { %v1306_v55 = vadd.f32 %v1305_v54, %v3420_v52  ;;  %v2205_v56 = vpop.f32.mrb[18].mxu1 }
 0x4b3   : > { %v1317_v59 = vadd.f32 %v2205_v56, %v3420_v52  ;;  %v1308_v60 = vpop.f32.mrb[19].mxu1  ;;  %v1370_v62 = vmax.f32 %v1314_v49, 0.0 }
 0x4b4   : > { %v1309_v61 = vadd.f32 %v1308_v60, %v3420_v52  ;;  %v1368_v0 = vmax.f32 %v1306_v55, 0.0 }
 0x4b5   : > { %v1371_v63 = vmax.f32 %v1317_v59, 0.0 }
 0x4b6   : > { %v1369_v2 = vmax.f32 %v1309_v61, 0.0 }
 0x4b7   : > { %v1385_v3 = vpack.c.bf16 %v1371_v63, %v1370_v62 }
 0x4b8   : > { %v1384_v4 = vpack.c.bf16 %v1369_v2, %v1368_v0 }
 0x4ba   : > { %2234 = vmatprep.mubr.bf16.mxu1 %v1384_v4 }
 0x4bb   : > { %2235 = vmatmul.mubr.bf16.vlgmr.msra.gmra.mrb[32].mxu1 %v1385_v3 }
 0x4bc   : > { %2290 = vmatpush3.bf16.msra.mxu1 %v2475_v45  ;;  %v2482_v45 = vld [vmem:[#allocation14 + $0x38] sm:$0xff]  }
 0x4bd   : > { %2283 = vmatprep.subr.bf16.mxu1 %v2476_v46  ;;  %2264 = vmatprep.subr.bf16.mxu0 %v2482_v45 }
 0x4be   : > { %2265 = vmatpush3.bf16.msra.mxu0 %v2482_v45 }
 0x4c0   : > { %v2208_v5 = vpop.f32.mrb[20].mxu1  ;;  %2291 = vmatpush3.bf16.msra.mxu1 %v2476_v46  ;;  %v487_v46 = vld [vmem:[%s3519_s8 + $0x4] ss:$0 sm:$0xff] }
 0x4c1   : > { %v1330_v6 = vadd.f32 %v2208_v5, %v3420_v52  ;;  %v1321_v7 = vpop.f32.mrb[21].mxu1  ;;  %2284 = vmatprep.subr.bf16.mxu1 %v2477_v47 }
 0x4c2   : > { %v1322_v8 = vadd.f32 %v1321_v7, %v3420_v52  ;;  %v2209_v10 = vpop.f32.mrb[22].mxu1 }
 0x4c3   : > { %v1333_v11 = vadd.f32 %v2209_v10, %v3420_v52  ;;  %v1324_v1 = vpop.f32.mrb[23].mxu1  ;;  %v1374_v13 = vmax.f32 %v1330_v6, 0.0 }
 0x4c4   : > { %v1325_v12 = vadd.f32 %v1324_v1, %v3420_v52  ;;  %2292 = vmatpush3.bf16.msra.mxu1 %v2477_v47  ;;  %v1372_v9 = vmax.f32 %v1322_v8, 0.0 }
 0x4c5   : > { %v1375_v14 = vmax.f32 %v1333_v11, 0.0  ;;  %2285 = vmatprep.subr.bf16.mxu1 %v2478_v48 }
 0x4c6   : > { %v1373_v15 = vmax.f32 %v1325_v12, 0.0 }
 0x4c7   : > { %v1387_v16 = vpack.c.bf16 %v1375_v14, %v1374_v13 }
 0x4c8   : > { %v1386_v17 = vpack.c.bf16 %v1373_v15, %v1372_v9  ;;  %2293 = vmatpush3.bf16.msra.mxu1 %v2478_v48 }
 0x4c9   : > { %2286 = vmatprep.subr.bf16.mxu1 %v2479_v41 }
 0x4ca   : > { %2238 = vmatprep.mubr.bf16.mxu1 %v1386_v17 }
 0x4cb   : > { %2239 = vmatmul.mubr.bf16.gmra.mrb[36].mxu1 %v1387_v16 }
 0x4cc   : > { %2294 = vmatpush3.bf16.msra.mxu1 %v2479_v41 }
 0x4cd   : > { %2287 = vmatprep.subr.bf16.mxu1 %v2480_v50 }
 0x4d0   : > { %v2212_v18 = vpop.f32.mrb[24].mxu1  ;;  %2295 = vmatpush3.bf16.msra.mxu1 %v2480_v50 }
 0x4d1   : > { %v1346_v19 = vadd.f32 %v2212_v18, %v3420_v52  ;;  %v1337_v20 = vpop.f32.mrb[25].mxu1  ;;  %2288 = vmatprep.subr.bf16.mxu1 %v2481_v44 }
 0x4d2   : > { %v1338_v22 = vadd.f32 %v1337_v20, %v3420_v52  ;;  %v2213_v23 = vpop.f32.mrb[26].mxu1 }
 0x4d3   : > { %v1349_v24 = vadd.f32 %v2213_v23, %v3420_v52  ;;  %v1340_v57 = vpop.f32.mrb[27].mxu1  ;;  %v1378_v21 = vmax.f32 %v1346_v19, 0.0 }
 0x4d4   : > { %v1341_v25 = vadd.f32 %v1340_v57, %v3420_v52  ;;  %v1376_v28 = vmax.f32 %v1338_v22, 0.0  ;;  %2296 = vmatpush3.bf16.msra.mxu1 %v2481_v44 }
 0x4d5   : > { %v1379_v26 = vmax.f32 %v1349_v24, 0.0  ;;  %2289 = vmatprep.subr.bf16.mxu1 %v2482_v45 }
 0x4d6   : > { %v1377_v29 = vmax.f32 %v1341_v25, 0.0 }
 0x4d7   : > { %v1389_v58 = vpack.c.bf16 %v1379_v26, %v1378_v21 }
 0x4d8   : > { %v1388_v27 = vpack.c.bf16 %v1377_v29, %v1376_v28  ;;  %2297 = vmatpush3.bf16.msra.mxu1 %v2482_v45 }
 0x4da   : > { %2242 = vmatprep.mubr.bf16.mxu1 %v1388_v27 }
 0x4db   : > { %2243 = vmatmul.mubr.bf16.gmra.mrb[40].mxu1 %v1389_v58 }
 0x4e0   : > { %v2216_v30 = vpop.f32.mrb[28].mxu1 }
 0x4e1   : > { %v1362_v51 = vadd.f32 %v2216_v30, %v3420_v52  ;;  %v1353_v32 = vpop.f32.mrb[29].mxu1 }
 0x4e2   : > { %v1354_v33 = vadd.f32 %v1353_v32, %v3420_v52  ;;  %v2217_v34 = vpop.f32.mrb[30].mxu1 }
 0x4e3   : > { %v1365_v35 = vadd.f32 %v2217_v34, %v3420_v52  ;;  %v1356_v36 = vpop.f32.mrb[31].mxu1  ;;  %v1382_v37 = vmax.f32 %v1362_v51, 0.0 }
 0x4e4   : > { %v1357_v31 = vadd.f32 %v1356_v36, %v3420_v52  ;;  %v1380_v39 = vmax.f32 %v1354_v33, 0.0 }
 0x4e5   : > { %v1383_v38 = vmax.f32 %v1365_v35, 0.0 }
 0x4e6   : > { %v1381_v40 = vmax.f32 %v1357_v31, 0.0 }
 0x4e7   : > { %v1391_v42 = vpack.c.bf16 %v1383_v38, %v1382_v37  ;;  %v488_v38 = vld [vmem:[%s3519_s8 + $0x5] ss:$0 sm:$0xff] }
 0x4e8   : > { %v1390_v43 = vpack.c.bf16 %v1381_v40, %v1380_v39 }
 0x4ea   : > { %2246 = vmatprep.mubr.bf16.mxu1 %v1390_v43 }
 0x4eb   : > { %2247 = vmatmul.mubr.bf16.gmra.mrb[44].mxu1 %v1391_v42 }
 0x58e   : > { %v2236_v47 = vpop.f32.mrb[32].mxu1 }
 0x58f   : > { %v1499_v48 = vadd.f32 %v2236_v47, %v487_v46  ;;  %v1490_v41 = vpop.f32.mrb[33].mxu1 }
 0x590   : > { %v1491_v50 = vadd.f32 %v1490_v41, %v487_v46  ;;  %v2237_v52 = vpop.f32.mrb[34].mxu1 }
 0x591   : > { %v1502_v53 = vadd.f32 %v2237_v52, %v487_v46  ;;  %v1493_v49 = vpop.f32.mrb[35].mxu1  ;;  %v1555_v55 = vmax.f32 %v1499_v48, 0.0 }
 0x592   : > { %v1494_v54 = vadd.f32 %v1493_v49, %v487_v46  ;;  %v1553_v59 = vmax.f32 %v1491_v50, 0.0 }
 0x593   : > { %v1556_v56 = vmax.f32 %v1502_v53, 0.0 }
 0x594   : > { %v1554_v60 = vmax.f32 %v1494_v54, 0.0 }
 0x595   : > { %v1570_v61 = vpack.c.bf16 %v1556_v56, %v1555_v55 }
 0x596   : > { %v1569_v62 = vpack.c.bf16 %v1554_v60, %v1553_v59 }
 0x598   : > { %2266 = vmatprep.mubr.bf16.mxu0 %v1569_v62 }
 0x599   : > { %2267 = vmatmul.mubr.bf16.vlgmr.msra.gmra.mrb[48].mxu0 %v1570_v61 }
 0x59e   : > { %v2240_v63 = vpop.f32.mrb[36].mxu1 }
 0x59f   : > { %v1515_v0 = vadd.f32 %v2240_v63, %v487_v46  ;;  %v1506_v2 = vpop.f32.mrb[37].mxu1 }
 0x5a0   : > { %v1507_v3 = vadd.f32 %v1506_v2, %v487_v46  ;;  %v2241_v4 = vpop.f32.mrb[38].mxu1 }
 0x5a1   : > { %v1518_v5 = vadd.f32 %v2241_v4, %v487_v46  ;;  %v1509_v6 = vpop.f32.mrb[39].mxu1  ;;  %v1559_v8 = vmax.f32 %v1515_v0, 0.0 }
 0x5a2   : > { %v1510_v7 = vadd.f32 %v1509_v6, %v487_v46  ;;  %v1557_v11 = vmax.f32 %v1507_v3, 0.0 }
 0x5a3   : > { %v1560_v10 = vmax.f32 %v1518_v5, 0.0 }
 0x5a4   : > { %v1558_v1 = vmax.f32 %v1510_v7, 0.0 }
 0x5a5   : > { %v1572_v12 = vpack.c.bf16 %v1560_v10, %v1559_v8 }
 0x5a6   : > { %v1571_v13 = vpack.c.bf16 %v1558_v1, %v1557_v11 }
 0x5a8   : > { %2270 = vmatprep.mubr.bf16.mxu0 %v1571_v13 }
 0x5a9   : > { %2271 = vmatmul.mubr.bf16.gmra.mrb[52].mxu0 %v1572_v12 }
 0x5ae   : > { %v2244_v14 = vpop.f32.mrb[40].mxu1 }
 0x5af   : > { %v1531_v9 = vadd.f32 %v2244_v14, %v487_v46  ;;  %v1522_v15 = vpop.f32.mrb[41].mxu1 }
 0x5b0   : > { %v1523_v16 = vadd.f32 %v1522_v15, %v487_v46  ;;  %v2245_v17 = vpop.f32.mrb[42].mxu1 }
 0x5b1   : > { %v1534_v18 = vadd.f32 %v2245_v17, %v487_v46  ;;  %v1525_v19 = vpop.f32.mrb[43].mxu1  ;;  %v1563_v22 = vmax.f32 %v1531_v9, 0.0 }
 0x5b2   : > { %v1526_v20 = vadd.f32 %v1525_v19, %v487_v46  ;;  %v1561_v24 = vmax.f32 %v1523_v16, 0.0 }
 0x5b3   : > { %v1564_v23 = vmax.f32 %v1534_v18, 0.0 }
 0x5b4   : > { %v1562_v57 = vmax.f32 %v1526_v20, 0.0 }
 0x5b5   : > { %v1574_v25 = vpack.c.bf16 %v1564_v23, %v1563_v22 }
 0x5b6   : > { %v1573_v21 = vpack.c.bf16 %v1562_v57, %v1561_v24 }
 0x5b8   : > { %2274 = vmatprep.mubr.bf16.mxu1 %v1573_v21 }
 0x5b9   : > { %2275 = vmatmul.mubr.bf16.vlgmr.msra.gmra.mrb[48].mxu1 %v1574_v25 }
 0x5be   : > { %v2248_v26 = vpop.f32.mrb[44].mxu1 }
 0x5bf   : > { %v1547_v28 = vadd.f32 %v2248_v26, %v487_v46  ;;  %v1538_v29 = vpop.f32.mrb[45].mxu1 }
 0x5c0   : > { %v1539_v58 = vadd.f32 %v1538_v29, %v487_v46  ;;  %v2249_v27 = vpop.f32.mrb[46].mxu1 }
 0x5c1   : > { %v1550_v30 = vadd.f32 %v2249_v27, %v487_v46  ;;  %v1541_v51 = vpop.f32.mrb[47].mxu1  ;;  %v1567_v33 = vmax.f32 %v1547_v28, 0.0 }
 0x5c2   : > { %v1542_v32 = vadd.f32 %v1541_v51, %v487_v46  ;;  %v1565_v35 = vmax.f32 %v1539_v58, 0.0 }
 0x5c3   : > { %v1568_v34 = vmax.f32 %v1550_v30, 0.0 }
 0x5c4   : > { %v1566_v36 = vmax.f32 %v1542_v32, 0.0 }
 0x5c5   : > { %v1576_v31 = vpack.c.bf16 %v1568_v34, %v1567_v33 }
 0x5c6   : > { %v1575_v37 = vpack.c.bf16 %v1566_v36, %v1565_v35 }
 0x5c8   : > { %2278 = vmatprep.mubr.bf16.mxu1 %v1575_v37 }
 0x5c9   : > { %2279 = vmatmul.mubr.bf16.gmra.mrb[52].mxu1 %v1576_v31 }
 0x66c   : > { %v2268_v39 = vpop.f32.mrb[48].mxu0 }
 0x66d   : > { %v1684_v40 = vadd.f32 %v2268_v39, %v488_v38  ;;  %v1675_v42 = vpop.f32.mrb[49].mxu0 }
 0x66e   : > { %v1676_v43 = vadd.f32 %v1675_v42, %v488_v38  ;;  %v2269_v44 = vpop.f32.mrb[50].mxu0 }
 0x66f   : > { %1740 = vst [vmem:[%s3296_s4 + $0x30] sm:$0xff] %v1684_v40  ;;  %v1687_v45 = vadd.f32 %v2269_v44, %v488_v38  ;;  %v1678_v46 = vpop.f32.mrb[51].mxu0 }
 0x670   : > { %1738 = vst [vmem:[%s3296_s4] sm:$0xff] %v1676_v43  ;;  %v1679_v47 = vadd.f32 %v1678_v46, %v488_v38 }
 0x671   : > { %1741 = vst [vmem:[%s3296_s4 + $0x48] sm:$0xff] %v1687_v45 }
 0x672   : > { %1739 = vst [vmem:[%s3296_s4 + $0x18] sm:$0xff] %v1679_v47 }
 0x67c   : > { %v2272_v48 = vpop.f32.mrb[52].mxu0 }
 0x67d   : > { %v1700_v41 = vadd.f32 %v2272_v48, %v488_v38  ;;  %v1691_v50 = vpop.f32.mrb[53].mxu0 }
 0x67e   : > { %v1692_v52 = vadd.f32 %v1691_v50, %v488_v38  ;;  %v2273_v53 = vpop.f32.mrb[54].mxu0 }
 0x67f   : > { %1744 = vst [vmem:[%s3296_s4 + $0x90] sm:$0xff] %v1700_v41  ;;  %v1703_v49 = vadd.f32 %v2273_v53, %v488_v38  ;;  %v1694_v54 = vpop.f32.mrb[55].mxu0 }
 0x680   : > { %1742 = vst [vmem:[%s3296_s4 + $0x60] sm:$0xff] %v1692_v52  ;;  %v1695_v55 = vadd.f32 %v1694_v54, %v488_v38 }
 0x681   : > { %1745 = vst [vmem:[%s3296_s4 + $0xa8] sm:$0xff] %v1703_v49 }
 0x682   : > { %1743 = vst [vmem:[%s3296_s4 + $0x78] sm:$0xff] %v1695_v55 }
 0x68c   : > { %v2276_v56 = vpop.f32.mrb[48].mxu1 }
 0x68d   : > { %v1716_v59 = vadd.f32 %v2276_v56, %v488_v38  ;;  %v1707_v60 = vpop.f32.mrb[49].mxu1 }
 0x68e   : > { %v1708_v61 = vadd.f32 %v1707_v60, %v488_v38  ;;  %v2277_v62 = vpop.f32.mrb[50].mxu1 }
 0x68f   : > { %1748 = vst [vmem:[%s3296_s4 + $0xf0] sm:$0xff] %v1716_v59  ;;  %v1719_v63 = vadd.f32 %v2277_v62, %v488_v38  ;;  %v1710_v0 = vpop.f32.mrb[51].mxu1 }
 0x690   : > { %1746 = vst [vmem:[%s3296_s4 + $0xc0] sm:$0xff] %v1708_v61  ;;  %v1711_v2 = vadd.f32 %v1710_v0, %v488_v38 }
 0x691   : > { %1749 = vst [vmem:[%s3296_s4 + $0x108] sm:$0xff] %v1719_v63 }
 0x692   : > { %1747 = vst [vmem:[%s3296_s4 + $0xd8] sm:$0xff] %v1711_v2 }
 0x69c   : > { %v2280_v3 = vpop.f32.mrb[52].mxu1 }
 0x69d   : > { %v1732_v4 = vadd.f32 %v2280_v3, %v488_v38  ;;  %v1723_v5 = vpop.f32.mrb[53].mxu1 }
 0x69e   : > { %v1724_v6 = vadd.f32 %v1723_v5, %v488_v38  ;;  %v2281_v7 = vpop.f32.mrb[54].mxu1 }
 0x69f   : > { %1752 = vst [vmem:[%s3296_s4 + $0x150] sm:$0xff] %v1732_v4  ;;  %v1735_v8 = vadd.f32 %v2281_v7, %v488_v38  ;;  %v1726_v10 = vpop.f32.mrb[55].mxu1 }
 0x6a0   : > { %1750 = vst [vmem:[%s3296_s4 + $0x120] sm:$0xff] %v1724_v6  ;;  %v1727_v11 = vadd.f32 %v1726_v10, %v488_v38 }
 0x6a1   : > { %1753 = vst [vmem:[%s3296_s4 + $0x168] sm:$0xff] %v1735_v8 }
 0x6a2   : > { %1751 = vst [vmem:[%s3296_s4 + $0x138] sm:$0xff] %v1727_v11 }
 0x6a3   : > { %2756 = shalt.err (!%p2753_p3)
}
 0x6a4   : > { %s2757_s4 = scalar_lea.hbm %s3462_s19, 6144  ;;  %s2761_s0 = scalar_lea.hbm %s3566_s26, 12288 }
 0x6a5   : > { %p2758_p12 = scmp.ne.s32.totalorder %s3462_s19, %s2757_s4  ;;  %p2762_p0 = scmp.lt.u32.totalorder %s3462_s19, %s3566_s26 }
 0x6a6   : > { %p2763_p6 = scmp.lt.u32.totalorder %s2761_s0, %s2757_s4  ;;  %p2765_p4 = scmp.lt.u32.totalorder %s2757_s4, %s3462_s19 }
 0x6a7   : > { %p2759_p1 = pnand %p2758_p12, %p3567_p10 }
 0x6a8   : > { %p2764_p2 = por %p2763_p6, %p2762_p0 }
 0x6a9   : > { %p2760_p13 = pneg %p2759_p1 }
 0x6aa   : > { %p2766_p5 = por %p2765_p4, %p2764_p2 }
 0x6ac   : > { %p2767_p7 = pnand %p2766_p5, %p2760_p13 }
 0x6ae   : > { %2770 = shalt.err (!%p2767_p7)
}
 0x6af   : > { %s2845_s5 = smov 384   ;;  %s2846_s3 = smov 24  }
 0x6b0   : > { %2328 = dma.vmem_to_hbm [thread:$0]  (%p3567_p10), %s3464_s16, 6144, %s3462_s19, %s1787_s15, %s2845_s5, %s2845_s5, %s2846_s3  }
 0x6b1 PF: > { %s1816_s13 = sand.u32 1, %s2817_s30   ;;  %p3568_p9 = scmp.ne.s32.totalorder %s3552_s22, 0 }
 0x6b2   : > { %p3569_p8 = scmp.ge.s32.totalorder %s2829_s12, 2  ;;  %s1817_s29 = scalar_lea.sflag [#allocation4], %s1816_s13 }
 0x6b4   : > { %p2357_p11 = pnand %p3569_p8, %p3568_p9 }
 0x6b6   : > { %2812 = dma.done.wait (!%p2357_p11), %s1817_s29, 6144  }
 0x6b7   : > { %2814 = vsyncadd (!%p2357_p11), %s1817_s29, 4294961152  ;;  %p28_p3 = scmp.ge.s32.totalorder %s3098_s27, 4   ;;  %s3570_s30 = smov %s2821_s10 }
 0x6b8   : > { %s3571_s10 = smov %s2825_s11  ;;  %s3572_s11 = smov %s3109_s18 }
 0x6b9   : > { %s3573_s12 = smov %s3098_s27  ;;  %30 = sbr.rel (!%p28_p3) target bundleno = 17 (0x11), region = 139 }
 0x6c0   :  { %1822 = vsyncpa [#allocation3], 1 }
 0x6c1   :  { %1824 = vsyncpa [#allocation3 + $0x1], 1 }
 0x6c2   :  { %1825 = vsyncpa [#allocation6], 1 }
 0x6c3   :  { %1827 = vsyncpa [#allocation6 + $0x1], 1 }
 0x6c4   :  { %1828 = vsyncpa [#allocation9], 1 }
 0x6c5   :  { %1829 = vsyncpa [#allocation12], 1 }
 0x6c6   :  { %1830 = vsyncpa [#allocation15], 1 }
 0x6c7   :  { %1831 = vsyncpa [#allocation4], 1 }
 0x6c8   :  { %1833 = vsyncpa [#allocation4 + $0x1], 1 }

</bundles_post_ra>
